<compile_context>
chip_gen: v5e
topology: v5e:2x2
jax: 0.10.0
libtpu: 0.0.40
codegen_flags: <defaults>
</compile_context>

<pallas_src>
import jax
import jax.numpy as jnp
from jax.experimental import pallas as pl
from jax.experimental.pallas import tpu as pltpu

IN_FEATURES = 6920
HIDDEN = 100
OUT_FEATURES = 2

IN_PAD = 7040   # 55 * 128
HID_PAD = 128   # full lane width


def _round_up(n, m):
    return ((n + m - 1) // m) * m


def net_kernel(x_ref, u_ref, w1_ref, b1_ref, w2_ref, b2_ref, o_ref):
    # ---- fc1: (TB, IN_PAD)[bf16] @ (IN_PAD, 128)[bf16] -> f32 accumulate ----
    h = jnp.dot(x_ref[...], w1_ref[...], preferred_element_type=jnp.float32)
    h = h + b1_ref[...]

    # ---- dropout(p=0.5) fused with relu: keep w.p. 0.5, survivors * 2 ----
    keep = u_ref[...] < 0.5
    h = jnp.where(jnp.logical_and(keep, h > 0.0), h * 2.0, 0.0)

    # ---- fc2: (TB, 128) @ (128, 2) + (1, 2), then sigmoid ----
    y = jnp.dot(h, w2_ref[...], preferred_element_type=jnp.float32) + b2_ref[...]
    o_ref[...] = jax.nn.sigmoid(y).astype(o_ref.dtype)


def net_forward(x, w1, b1, w2, b2, key, *, block_b=512):
    """x: (B, 6920) f32; w1: (6920, 100); b1: (1, 100); w2: (100, 2); b2: (1, 2).

    Returns (B, 2) f32.  Dropout is active (F.dropout default training=True);
    the mask is derived from `key` on the host and streamed per batch tile.
    """
    B = x.shape[0]

    # Batch tile: multiple of 8 sublanes, no larger than needed for tiny B.
    tb = min(block_b, _round_up(max(B, 1), 8))
    b_pad = _round_up(B, tb)

    # Lane/feature padding (zeros are exact: they contribute 0 everywhere).
    x_p = jnp.zeros((b_pad, IN_PAD), jnp.bfloat16).at[:B, :IN_FEATURES].set(
        x.astype(jnp.bfloat16))
    w1_p = jnp.zeros((IN_PAD, HID_PAD), jnp.bfloat16).at[:IN_FEATURES, :HIDDEN].set(
        w1.astype(jnp.bfloat16))
    b1_p = jnp.zeros((1, HID_PAD), jnp.float32).at[:, :HIDDEN].set(
        b1.reshape(1, HIDDEN).astype(jnp.float32))
    w2_p = jnp.zeros((HID_PAD, OUT_FEATURES), jnp.float32).at[:HIDDEN, :].set(
        w2.astype(jnp.float32))
    b2_p = b2.reshape(1, OUT_FEATURES).astype(jnp.float32)

    # Dropout uniforms, one row per (padded) batch row; each grid step reads
    # its own (tb, 128) slice, so every tile gets an independent mask.
    u = jax.random.uniform(key, (b_pad, HID_PAD), jnp.float32)

    grid = (b_pad // tb,)
    out = pl.pallas_call(
        net_kernel,
        out_shape=jax.ShapeDtypeStruct((b_pad, OUT_FEATURES), jnp.float32),
        grid=grid,
        in_specs=[
            pl.BlockSpec((tb, IN_PAD), lambda i: (i, 0)),             # x (streamed)
            pl.BlockSpec((tb, HID_PAD), lambda i: (i, 0)),            # dropout uniforms
            pl.BlockSpec((IN_PAD, HID_PAD), lambda i: (0, 0)),        # w1 (resident)
            pl.BlockSpec((1, HID_PAD), lambda i: (0, 0)),             # b1
            pl.BlockSpec((HID_PAD, OUT_FEATURES), lambda i: (0, 0)),  # w2
            pl.BlockSpec((1, OUT_FEATURES), lambda i: (0, 0)),        # b2
        ],
        out_specs=pl.BlockSpec((tb, OUT_FEATURES), lambda i: (i, 0)),
        compiler_params=pltpu.CompilerParams(
            dimension_semantics=("parallel",),
            vmem_limit_bytes=48 * 1024 * 1024,
        ),
    )(x_p, u, w1_p, b1_p, w2_p, b2_p)

    return out[:B]


if __name__ == "__main__":
    key = jax.random.PRNGKey(0)
    kx, kw1, kb1, kw2, kb2, kdrop = jax.random.split(key, 6)

    B = 4
    x = jax.random.normal(kx, (B, IN_FEATURES), dtype=jnp.float32)

    # Deterministic init mirroring PyTorch Linear defaults:
    # U(-1/sqrt(fan_in), +1/sqrt(fan_in)); weights stored as (in, out).
    k1 = float(1.0 / (IN_FEATURES ** 0.5))
    w1 = jax.random.uniform(kw1, (IN_FEATURES, HIDDEN), jnp.float32, -k1, k1)
    b1 = jax.random.uniform(kb1, (1, HIDDEN), jnp.float32, -k1, k1)
    k2 = float(1.0 / (HIDDEN ** 0.5))
    w2 = jax.random.uniform(kw2, (HIDDEN, OUT_FEATURES), jnp.float32, -k2, k2)
    b2 = jax.random.uniform(kb2, (1, OUT_FEATURES), jnp.float32, -k2, k2)

    out = net_forward(x, w1, b1, w2, b2, kdrop)
    out = jax.block_until_ready(out)

    assert out.shape == (B, OUT_FEATURES)
    assert bool(jnp.all(jnp.isfinite(out)))
    assert bool(jnp.all((out >= 0.0) & (out <= 1.0)))  # sigmoid range
    print("KERNEL_OK")
</pallas_src>

<mosaic_0001>
module attributes {stable_mosaic.version = 11 : i64} {
  func.func @net_kernel(%arg0: i32, %arg1: memref<8x7040xbf16, #tpu.memory_space<vmem>>, %arg2: memref<8x128xf32, #tpu.memory_space<vmem>>, %arg3: memref<7040x128xbf16, #tpu.memory_space<vmem>>, %arg4: memref<1x128xf32, #tpu.memory_space<vmem>>, %arg5: memref<128x2xf32, #tpu.memory_space<vmem>>, %arg6: memref<1x2xf32, #tpu.memory_space<vmem>>, %arg7: memref<8x2xf32, #tpu.memory_space<vmem>>) attributes {dimension_semantics = [#tpu.dimension_semantics<parallel>], iteration_bounds = array<i64: 1>, scalar_prefetch = 0 : i64, scratch_operands = 0 : i64, tpu.core_type = #tpu.core_type<tc>, window_params = [{transform_indices = @transform_0, window_bounds = array<i64: 8, 7040>}, {transform_indices = @transform_1, window_bounds = array<i64: 8, 128>}, {pipeline_mode = #tpu.pipeline_mode<synchronous>, transform_indices = @transform_2, window_bounds = array<i64: 7040, 128>}, {pipeline_mode = #tpu.pipeline_mode<synchronous>, transform_indices = @transform_3, window_bounds = array<i64: 1, 128>}, {pipeline_mode = #tpu.pipeline_mode<synchronous>, transform_indices = @transform_4, window_bounds = array<i64: 128, 2>}, {pipeline_mode = #tpu.pipeline_mode<synchronous>, transform_indices = @transform_5, window_bounds = array<i64: 1, 2>}, {transform_indices = @transform_6, window_bounds = array<i64: 8, 2>}]} {
    %c0 = arith.constant 0 : index
    %c0_0 = arith.constant 0 : index
    %0 = vector.load %arg1[%c0, %c0_0] : memref<8x7040xbf16, #tpu.memory_space<vmem>>, vector<8x7040xbf16>
    %c0_1 = arith.constant 0 : index
    %c0_2 = arith.constant 0 : index
    %1 = vector.load %arg3[%c0_1, %c0_2] : memref<7040x128xbf16, #tpu.memory_space<vmem>>, vector<7040x128xbf16>
    %cst = arith.constant dense<0.000000e+00> : vector<8x128xf32>
    %2 = tpu.matmul %0, %1, %cst {dimension_numbers = #tpu.dot_dimension_numbers<[1], [0], [0], [1], [0, 0, 1, 1], [], []>} : vector<8x7040xbf16>, vector<7040x128xbf16>, vector<8x128xf32> -> vector<8x128xf32>
    %c0_3 = arith.constant 0 : index
    %c0_4 = arith.constant 0 : index
    %3 = vector.load %arg4[%c0_3, %c0_4] : memref<1x128xf32, #tpu.memory_space<vmem>>, vector<1x128xf32>
    %4 = vector.broadcast %3 : vector<1x128xf32> to vector<8x128xf32>
    %5 = arith.addf %2, %4 : vector<8x128xf32>
    %c0_5 = arith.constant 0 : index
    %c0_6 = arith.constant 0 : index
    %6 = vector.load %arg2[%c0_5, %c0_6] : memref<8x128xf32, #tpu.memory_space<vmem>>, vector<8x128xf32>
    %cst_7 = arith.constant 5.000000e-01 : f32
    %7 = vector.broadcast %cst_7 : f32 to vector<8x128xf32>
    %8 = arith.cmpf olt, %6, %7 : vector<8x128xf32>
    %cst_8 = arith.constant 0.000000e+00 : f32
    %9 = vector.broadcast %cst_8 : f32 to vector<8x128xf32>
    %10 = arith.cmpf ogt, %5, %9 : vector<8x128xf32>
    %11 = arith.andi %8, %10 : vector<8x128xi1>
    %cst_9 = arith.constant 2.000000e+00 : f32
    %12 = vector.broadcast %cst_9 : f32 to vector<8x128xf32>
    %13 = arith.mulf %5, %12 : vector<8x128xf32>
    %cst_10 = arith.constant 0.000000e+00 : f32
    %14 = vector.broadcast %cst_10 : f32 to vector<8x128xf32>
    %15 = arith.select %11, %13, %14 : vector<8x128xi1>, vector<8x128xf32>
    %c0_11 = arith.constant 0 : index
    %c0_12 = arith.constant 0 : index
    %16 = vector.load %arg5[%c0_11, %c0_12] : memref<128x2xf32, #tpu.memory_space<vmem>>, vector<128x2xf32>
    %cst_13 = arith.constant dense<0.000000e+00> : vector<8x2xf32>
    %17 = tpu.matmul %15, %16, %cst_13 {dimension_numbers = #tpu.dot_dimension_numbers<[1], [0], [0], [1], [0, 0, 1, 1], [], []>} : vector<8x128xf32>, vector<128x2xf32>, vector<8x2xf32> -> vector<8x2xf32>
    %c0_14 = arith.constant 0 : index
    %c0_15 = arith.constant 0 : index
    %18 = vector.load %arg6[%c0_14, %c0_15] : memref<1x2xf32, #tpu.memory_space<vmem>>, vector<1x2xf32>
    %19 = vector.broadcast %18 : vector<1x2xf32> to vector<8x2xf32>
    %20 = arith.addf %17, %19 : vector<8x2xf32>
    %21 = arith.negf %20 : vector<8x2xf32>
    %22 = math.exp %21 : vector<8x2xf32>
    %cst_16 = arith.constant 1.000000e+00 : f32
    %23 = vector.broadcast %cst_16 : f32 to vector<8x2xf32>
    %24 = arith.addf %23, %22 : vector<8x2xf32>
    %25 = arith.divf %23, %24 : vector<8x2xf32>
    %c0_17 = arith.constant 0 : index
    %c0_18 = arith.constant 0 : index
    %26 = vector.load %arg7[%c0_17, %c0_18] : memref<8x2xf32, #tpu.memory_space<vmem>>, vector<8x2xf32>
    tpu.vector_store %arg7[%c0_17, %c0_18], %25 {strides = array<i32>} : memref<8x2xf32, #tpu.memory_space<vmem>>, vector<8x2xf32>,
    return
  }
  func.func @transform_0(%arg0: i32) -> (i32, i32) {
    %c0_i32 = arith.constant 0 : i32
    %c0_i32_0 = arith.constant 0 : i32
    return %arg0, %c0_i32 : i32, i32
  }
  func.func @transform_1(%arg0: i32) -> (i32, i32) {
    %c0_i32 = arith.constant 0 : i32
    %c0_i32_0 = arith.constant 0 : i32
    return %arg0, %c0_i32 : i32, i32
  }
  func.func @transform_2(%arg0: i32) -> (i32, i32) {
    %c0_i32 = arith.constant 0 : i32
    %c0_i32_0 = arith.constant 0 : i32
    %c0_i32_1 = arith.constant 0 : i32
    return %c0_i32, %c0_i32_0 : i32, i32
  }
  func.func @transform_3(%arg0: i32) -> (i32, i32) {
    %c0_i32 = arith.constant 0 : i32
    %c0_i32_0 = arith.constant 0 : i32
    %c0_i32_1 = arith.constant 0 : i32
    return %c0_i32, %c0_i32_0 : i32, i32
  }
  func.func @transform_4(%arg0: i32) -> (i32, i32) {
    %c0_i32 = arith.constant 0 : i32
    %c0_i32_0 = arith.constant 0 : i32
    %c0_i32_1 = arith.constant 0 : i32
    return %c0_i32, %c0_i32_0 : i32, i32
  }
  func.func @transform_5(%arg0: i32) -> (i32, i32) {
    %c0_i32 = arith.constant 0 : i32
    %c0_i32_0 = arith.constant 0 : i32
    %c0_i32_1 = arith.constant 0 : i32
    return %c0_i32, %c0_i32_0 : i32, i32
  }
  func.func @transform_6(%arg0: i32) -> (i32, i32) {
    %c0_i32 = arith.constant 0 : i32
    %c0_i32_0 = arith.constant 0 : i32
    return %arg0, %c0_i32 : i32, i32
  }
}

</mosaic_0001>

<bundles_post_ra>
// kernel: tpu_custom_call.1
= control target key start
LH: loop header
LB: loop body
LE: loop exit
PB: predicated region body
PF: predicated region fallthrough
CT: control target
= control target key end

     0   :  { %11 = vsyncpa [#allocation3], 0  ;;  %s7097_s0 = inlined_call_operand.hbm [shape: bf16[8,7040], index: 0, kind: input, shape index: {}]   ;;  %s7098_s1 = inlined_call_operand.hbm [shape: f32[8,128], index: 1, kind: input, shape index: {}]   ;;  %s7099_s2 = inlined_call_operand.hbm [shape: bf16[7040,128], index: 2, kind: input, shape index: {}]   ;;  %s7100_s3 = inlined_call_operand.hbm [shape: f32[1,128], index: 3, kind: input, shape index: {}]   ;;  %s7101_s4 = inlined_call_operand.vmem [shape: f32[128,2], index: 4, kind: input, shape index: {}]   ;;  %s7102_s5 = inlined_call_operand.hbm [shape: f32[1,2], index: 5, kind: input, shape index: {}]   ;;  %s7103_s6 = inlined_call_operand.vmem [shape: f32[8,2], index: 6, kind: output, shape index: {}]  }
   0x1   :  { %12 = vsyncpa [#allocation5], 0  ;;  %s30_s23 = sshll.u32 %s7098_s1, 4  ;;  %s31_s23 = int_to_ptr.hbm [resolvable:$true] %s30_s23 }
   0x2   :  { %13 = vsyncpa [#allocation8], 0  ;;  %s6968_s24 = smov [#allocation4]   ;;  %s54_s28 = sshll.u32 %s7100_s3, 4  ;;  %s55_s28 = int_to_ptr.hbm [resolvable:$true] %s54_s28 }
   0x3   :  { %s32_s25 = sshll.u32 %s6968_s24, 4  ;;  %s6969_s29 = smov [#allocation7]   ;;  %s33_s25 = int_to_ptr.vmem [resolvable:$true] %s32_s25 }
   0x4   :  { %35 = dma.hbm_to_vmem [thread:$0]  %s31_s23, 128, %s33_s25, [#allocation5]  }
   0x5   :  { %s56_s30 = sshll.u32 %s6969_s29, 4  ;;  %s19_s9 = sshll.u32 %s7097_s0, 4  ;;  %s57_s30 = int_to_ptr.vmem [resolvable:$true] %s56_s30  ;;  %s20_s9 = int_to_ptr.hbm [resolvable:$true] %s19_s9 }
   0x6   :  { %59 = dma.hbm_to_vmem [thread:$0]  %s55_s28, 16, %s57_s30, [#allocation8]  }
   0x7   :  { %s40_s11 = sshll.u32 %s7099_s2, 4  ;;  %s6970_s12 = smov [#allocation2]   ;;  %s41_s11 = int_to_ptr.hbm [resolvable:$true] %s40_s11 }
   0x8   :  { %s21_s13 = sshll.u32 %s6970_s12, 4  ;;  %s6971_s3 = smov [#allocation6]   ;;  %s22_s13 = int_to_ptr.vmem [resolvable:$true] %s21_s13 }
   0x9   :  { %24 = dma.hbm_to_vmem [thread:$0]  %s20_s9, 3520, %s22_s13, [#allocation3]  }
   0xa   :  { %s42_s14 = sshll.u32 %s6971_s3, 4  ;;  %s6972_s15 = smov 64   ;;  %s43_s14 = int_to_ptr.vmem [resolvable:$true] %s42_s14 }
   0xb   :  { %s6973_s16 = smov 4   ;;  %s67_s18 = sshll.u32 %s7102_s5, 4  ;;  %s68_s18 = int_to_ptr.hbm [resolvable:$true] %s67_s18 }
   0xc   :  { %48 = dma.hbm_to_vmem [thread:$0]  %s41_s11, 56320, %s43_s14, [#allocation5], %s6972_s15, %s6972_s15, %s6973_s16  }
   0xd   :  { %s6974_s19 = smov [#allocation9]  }
   0xe   :  { %s69_s20 = sshll.u32 %s6974_s19, 4  ;;  %s70_s20 = int_to_ptr.vmem [resolvable:$true] %s69_s20 }
   0xf   :  { %72 = dma.hbm_to_vmem [thread:$0]  %s68_s18, 16, %s70_s20, [#allocation8]  }
  0x10   :  { %6962 = dma.done.wait [#allocation3], 3520  }
  0x11   :  { %6963 = vsyncadd [#allocation3], 4294963776 }
  0x12   :  { %6964 = dma.done.wait [#allocation5], 56448  }
  0x13   :  { %6965 = vsyncadd [#allocation5], 4294910848 }
  0x14   :  { %6966 = dma.done.wait [#allocation8], 32  }
  0x15   :  { %6967 = vsyncadd [#allocation8], 4294967264  ;;  %v6396_v0 = vld [vmem:[#allocation6 + $0x38] sm:$0xff]  ;;  %v6395_v4 = vld [vmem:[#allocation6 + $0x30] sm:$0xff]  ;;  %vm4618_vm6 = vcmask 15360  }
  0x16   :  { %v6404_v1 = vld [vmem:[#allocation6 + $0x78] sm:$0xff]  ;;  %3838 = vmatpush.bf16.msra.mxu0 %v6396_v0  ;;  %v6403_v5 = vld [vmem:[#allocation6 + $0x70] sm:$0xff]  ;;  %v6394_v8 = vld [vmem:[#allocation6 + $0x28] sm:$0xff] }
  0x17   :  { %v6412_v2 = vld [vmem:[#allocation6 + $0xb8] sm:$0xff]  ;;  %3851 = vmatpush.bf16.msra.mxu1 %v6404_v1  ;;  %v6411_v6 = vld [vmem:[#allocation6 + $0xb0] sm:$0xff]  ;;  %v6402_v9 = vld [vmem:[#allocation6 + $0x68] sm:$0xff] }
  0x18   :  { %v6420_v3 = vld [vmem:[#allocation6 + $0xf8] sm:$0xff]  ;;  %3864 = vmatpush.bf16.msra.mxu2 %v6412_v2  ;;  %v6419_v7 = vld [vmem:[#allocation6 + $0xf0] sm:$0xff]  ;;  %v6410_v10 = vld [vmem:[#allocation6 + $0xa8] sm:$0xff] }
  0x19   :  { %3877 = vmatpush.bf16.msra.mxu3 %v6420_v3  ;;  %v6418_v11 = vld [vmem:[#allocation6 + $0xe8] sm:$0xff]  ;;  %v6393_v12 = vld [vmem:[#allocation6 + $0x20] sm:$0xff]  ;;  %v6392_v16 = vld [vmem:[#allocation6 + $0x18] sm:$0xff] }
  0x1a   :  { %3839 = vmatpush.bf16.msra.mxu0 %v6395_v4  ;;  %v6401_v13 = vld [vmem:[#allocation6 + $0x60] sm:$0xff]  ;;  %v6400_v17 = vld [vmem:[#allocation6 + $0x58] sm:$0xff]  ;;  %v6391_v20 = vld [vmem:[#allocation6 + $0x10] sm:$0xff] }
  0x1b   :  { %3852 = vmatpush.bf16.msra.mxu1 %v6403_v5  ;;  %v6409_v14 = vld [vmem:[#allocation6 + $0xa0] sm:$0xff]  ;;  %v6408_v18 = vld [vmem:[#allocation6 + $0x98] sm:$0xff]  ;;  %v6399_v21 = vld [vmem:[#allocation6 + $0x50] sm:$0xff] }
  0x1c   :  { %3865 = vmatpush.bf16.msra.mxu2 %v6411_v6  ;;  %v6417_v15 = vld [vmem:[#allocation6 + $0xe0] sm:$0xff]  ;;  %v6416_v19 = vld [vmem:[#allocation6 + $0xd8] sm:$0xff]  ;;  %v6407_v22 = vld [vmem:[#allocation6 + $0x90] sm:$0xff] }
  0x1d   :  { %3878 = vmatpush.bf16.msra.mxu3 %v6419_v7  ;;  %v6415_v23 = vld [vmem:[#allocation6 + $0xd0] sm:$0xff]  ;;  %v6390_v24 = vld [vmem:[#allocation6 + $0x8] sm:$0xff]  ;;  %v93_v26 = vld [vmem:[#allocation2] sm:$0xff] }
  0x1e   :  { %3840 = vmatpush.bf16.msra.mxu0 %v6394_v8  ;;  %v6398_v25 = vld [vmem:[#allocation6 + $0x48] sm:$0xff]  ;;  %v1033_v30 = vunpack.c.l.b16 %v93_v26  ;;  %v6389_v31 = vld [vmem:[#allocation6] sm:$0xff]  ;;  %v6428_v35 = vld [vmem:[#allocation6 + $0x138] sm:$0xff]  ;;  %v1034_v36 = vunpack.c.h.b16 %v93_v26 }
  0x1f   :  { %3853 = vmatpush.bf16.msra.mxu1 %v6402_v9  ;;  %v6406_v27 = vld [vmem:[#allocation6 + $0x88] sm:$0xff]  ;;  %v6397_v32 = vld [vmem:[#allocation6 + $0x40] sm:$0xff]  ;;  %v6436_v37 = vld [vmem:[#allocation6 + $0x178] sm:$0xff] }
  0x20   :  { %3866 = vmatpush.bf16.msra.mxu2 %v6410_v10  ;;  %v6414_v28 = vld [vmem:[#allocation6 + $0xc8] sm:$0xff]  ;;  %v6405_v34 = vld [vmem:[#allocation6 + $0x80] sm:$0xff]  ;;  %v6444_v38 = vld [vmem:[#allocation6 + $0x1b8] sm:$0xff]  ;;  %v1088_v40 = vpack.c.b16 %v1033_v30, %v1033_v30  ;;  %v1089_v45 = vpack.c.b16 %v1034_v36, %v1034_v36 }
  0x21   :  { %3879 = vmatpush.bf16.msra.mxu3 %v6418_v11  ;;  %v94_v29 = vld [vmem:[#allocation2 + $0x8] sm:$0xff]  ;;  %v6452_v42 = vld [vmem:[#allocation6 + $0x1f8] sm:$0xff]  ;;  %v6427_v44 = vld [vmem:[#allocation6 + $0x130] sm:$0xff] }
  0x22   :  { %3841 = vmatpush.bf16.msra.mxu0 %v6393_v12  ;;  %v1035_v33 = vunpack.c.l.b16 %v94_v29  ;;  %v6413_v39 = vld [vmem:[#allocation6 + $0xc0] sm:$0xff]  ;;  %v1036_v41 = vunpack.c.h.b16 %v94_v29  ;;  %v6435_v46 = vld [vmem:[#allocation6 + $0x170] sm:$0xff]  ;;  %v6426_v50 = vld [vmem:[#allocation6 + $0x128] sm:$0xff] }
  0x23   :  { %3854 = vmatpush.bf16.msra.mxu1 %v6401_v13  ;;  %v6443_v47 = vld [vmem:[#allocation6 + $0x1b0] sm:$0xff]  ;;  %v6434_v51 = vld [vmem:[#allocation6 + $0x168] sm:$0xff]  ;;  %v6425_v54 = vld [vmem:[#allocation6 + $0x120] sm:$0xff] }
  0x24   :  { %3867 = vmatpush.bf16.msra.mxu2 %v6409_v14  ;;  %v1090_v43 = vpack.c.b16 %v1035_v33, %v1035_v33  ;;  %v1091_v48 = vpack.c.b16 %v1036_v41, %v1036_v41  ;;  %v6451_v49 = vld [vmem:[#allocation6 + $0x1f0] sm:$0xff]  ;;  %v6442_v52 = vld [vmem:[#allocation6 + $0x1a8] sm:$0xff]  ;;  %v6433_v55 = vld [vmem:[#allocation6 + $0x160] sm:$0xff] }
  0x25   :  { %3880 = vmatpush.bf16.msra.mxu3 %v6417_v15  ;;  %v6450_v53 = vld [vmem:[#allocation6 + $0x1e8] sm:$0xff]  ;;  %v6441_v56 = vld [vmem:[#allocation6 + $0x1a0] sm:$0xff]  ;;  %v6424_v58 = vld [vmem:[#allocation6 + $0x118] sm:$0xff] }
  0x26   :  { %3842 = vmatpush.bf16.msra.mxu0 %v6392_v16  ;;  %v6449_v57 = vld [vmem:[#allocation6 + $0x1e0] sm:$0xff]  ;;  %v6432_v59 = vld [vmem:[#allocation6 + $0x158] sm:$0xff]  ;;  %v6423_v62 = vld [vmem:[#allocation6 + $0x110] sm:$0xff] }
  0x27   :  { %3855 = vmatpush.bf16.msra.mxu1 %v6400_v17  ;;  %v6440_v60 = vld [vmem:[#allocation6 + $0x198] sm:$0xff]  ;;  %v6431_v63 = vld [vmem:[#allocation6 + $0x150] sm:$0xff]  ;;  %v6422_v2 = vld [vmem:[#allocation6 + $0x108] sm:$0xff] }
  0x28   :  { %3868 = vmatpush.bf16.msra.mxu2 %v6408_v18  ;;  %v6448_v61 = vld [vmem:[#allocation6 + $0x1d8] sm:$0xff]  ;;  %v6439_v0 = vld [vmem:[#allocation6 + $0x190] sm:$0xff]  ;;  %v6430_v3 = vld [vmem:[#allocation6 + $0x148] sm:$0xff] }
  0x29   :  { %3881 = vmatpush.bf16.msra.mxu3 %v6416_v19  ;;  %v6447_v1 = vld [vmem:[#allocation6 + $0x1d0] sm:$0xff]  ;;  %v6438_v4 = vld [vmem:[#allocation6 + $0x188] sm:$0xff]  ;;  %v6421_v8 = vld [vmem:[#allocation6 + $0x100] sm:$0xff] }
  0x2a   :  { %3843 = vmatpush.bf16.msra.mxu0 %v6391_v20  ;;  %v96_v5 = vld [vmem:[#allocation2 + $0x18] sm:$0xff]  ;;  %v95_v6 = vld [vmem:[#allocation2 + $0x10] sm:$0xff]  ;;  %v6429_v10 = vld [vmem:[#allocation6 + $0x140] sm:$0xff] }
  0x2b   :  { %3856 = vmatpush.bf16.msra.mxu1 %v6399_v21  ;;  %v6446_v7 = vld [vmem:[#allocation6 + $0x1c8] sm:$0xff]  ;;  %v1039_v9 = vunpack.c.l.b16 %v96_v5  ;;  %v6437_v11 = vld [vmem:[#allocation6 + $0x180] sm:$0xff]  ;;  %v1037_v12 = vunpack.c.l.b16 %v95_v6  ;;  %v1038_v13 = vunpack.c.h.b16 %v95_v6  ;;  %v6460_v14 = vld [vmem:[#allocation6 + $0x238] sm:$0xff]  ;;  %v1040_v18 = vunpack.c.h.b16 %v96_v5 }
  0x2c   :  { %3869 = vmatpush.bf16.msra.mxu2 %v6407_v22  ;;  %v6468_v15 = vld [vmem:[#allocation6 + $0x278] sm:$0xff]  ;;  %v6445_v17 = vld [vmem:[#allocation6 + $0x1c0] sm:$0xff]  ;;  %v6466_v29 = vld [vmem:[#allocation6 + $0x268] sm:$0xff] }
  0x2d   :  { %3882 = vmatpush.bf16.msra.mxu3 %v6415_v23  ;;  %v6476_v16 = vld [vmem:[#allocation6 + $0x2b8] sm:$0xff]  ;;  %v1094_v20 = vpack.c.b16 %v1039_v9, %v1039_v9  ;;  %v1092_v21 = vpack.c.b16 %v1037_v12, %v1037_v12  ;;  %v1093_v22 = vpack.c.b16 %v1038_v13, %v1038_v13  ;;  %v6459_v23 = vld [vmem:[#allocation6 + $0x230] sm:$0xff]  ;;  %v1095_v26 = vpack.c.b16 %v1040_v18, %v1040_v18  ;;  %v6474_v30 = vld [vmem:[#allocation6 + $0x2a8] sm:$0xff] }
  0x2e   :  { %3844 = vmatpush.bf16.msra.mxu0 %v6390_v24  ;;  %v6484_v19 = vld [vmem:[#allocation6 + $0x2f8] sm:$0xff]  ;;  %v6467_v24 = vld [vmem:[#allocation6 + $0x270] sm:$0xff]  ;;  %v6465_v33 = vld [vmem:[#allocation6 + $0x260] sm:$0xff] }
  0x2f   :  { %3857 = vmatpush.bf16.msra.mxu1 %v6398_v25  ;;  %v6475_v25 = vld [vmem:[#allocation6 + $0x2b0] sm:$0xff]  ;;  %v6456_v36 = vld [vmem:[#allocation6 + $0x218] sm:$0xff]  ;;  %v6490_v6 = vld [vmem:[#allocation6 + $0x328] sm:$0xff] }
  0x30   :  { %3870 = vmatpush.bf16.msra.mxu2 %v6406_v27  ;;  %v6483_v27 = vld [vmem:[#allocation6 + $0x2f0] sm:$0xff]  ;;  %v6514_v9 = vld [vmem:[#allocation6 + $0x3e8] sm:$0xff]  ;;  %v6505_v12 = vld [vmem:[#allocation6 + $0x3a0] sm:$0xff] }
  0x31   :  { %3883 = vmatpush.bf16.msra.mxu3 %v6414_v28  ;;  %v6458_v28 = vld [vmem:[#allocation6 + $0x228] sm:$0xff]  ;;  %v6463_v41 = vld [vmem:[#allocation6 + $0x250] sm:$0xff]  ;;  %v6513_v13 = vld [vmem:[#allocation6 + $0x3e0] sm:$0xff] }
  0x32   :  { %3845 = vmatpush.bf16.msra.mxu0 %v6389_v31  ;;  %v6482_v31 = vld [vmem:[#allocation6 + $0x2e8] sm:$0xff]  ;;  %v6515_v5 = vld [vmem:[#allocation6 + $0x3f0] sm:$0xff] }
  0x33   :  { %3858 = vmatpush.bf16.msra.mxu1 %v6397_v32  ;;  %v6457_v32 = vld [vmem:[#allocation6 + $0x220] sm:$0xff]  ;;  %v6487_v18 = vld [vmem:[#allocation6 + $0x310] sm:$0xff] }
  0x34   :  { %3871 = vmatpush.bf16.msra.mxu2 %v6405_v34  ;;  %v6473_v34 = vld [vmem:[#allocation6 + $0x2a0] sm:$0xff] }
  0x35   :  { %3884 = vmatpush.bf16.msra.mxu3 %v6413_v39  ;;  %3846 = vmatmul.bf16.vlgmr.msra.gmra.mxu0 %v1088_v40  ;;  %v6480_v39 = vld [vmem:[#allocation6 + $0x2d8] sm:$0xff]  ;;  %v6455_v40 = vld [vmem:[#allocation6 + $0x210] sm:$0xff] }
  0x36   :  { %3890 = vmatpush.bf16.msrb.mxu0 %v6428_v35  ;;  %3859 = vmatmul.bf16.vlgmr.msra.gmra.mxu1 %v1089_v45  ;;  %v6481_v35 = vld [vmem:[#allocation6 + $0x2e0] sm:$0xff]  ;;  %v6462_v45 = vld [vmem:[#allocation6 + $0x248] sm:$0xff] }
  0x37   :  { %3903 = vmatpush.bf16.msrb.mxu1 %v6436_v37  ;;  %3872 = vmatmul.bf16.vlgmr.msra.gmra.mxu2 %v1090_v43  ;;  %v6464_v37 = vld [vmem:[#allocation6 + $0x258] sm:$0xff]  ;;  %v6479_v43 = vld [vmem:[#allocation6 + $0x2d0] sm:$0xff] }
  0x38   :  { %3916 = vmatpush.bf16.msrb.mxu2 %v6444_v38  ;;  %3885 = vmatmul.bf16.vlgmr.msra.gmra.mxu3 %v1091_v48  ;;  %v6472_v38 = vld [vmem:[#allocation6 + $0x298] sm:$0xff]  ;;  %v98_v48 = vld [vmem:[#allocation2 + $0x28] sm:$0xff] }
  0x39   :  { %3929 = vmatpush.bf16.msrb.mxu3 %v6452_v42  ;;  %v6471_v42 = vld [vmem:[#allocation6 + $0x290] sm:$0xff] }
  0x3a   :  { %3891 = vmatpush.bf16.msrb.mxu0 %v6427_v44  ;;  %v6454_v44 = vld [vmem:[#allocation6 + $0x208] sm:$0xff] }
  0x3b   :  { %3904 = vmatpush.bf16.msrb.mxu1 %v6435_v46  ;;  %v97_v46 = vld [vmem:[#allocation2 + $0x20] sm:$0xff] }
  0x3c   :  { %3917 = vmatpush.bf16.msrb.mxu2 %v6443_v47  ;;  %v6470_v47 = vld [vmem:[#allocation6 + $0x288] sm:$0xff] }
  0x3d   :  { %3930 = vmatpush.bf16.msrb.mxu3 %v6451_v49  ;;  %v6478_v49 = vld [vmem:[#allocation6 + $0x2c8] sm:$0xff] }
  0x3e   :  { %3892 = vmatpush.bf16.msrb.mxu0 %v6426_v50  ;;  %v1041_v50 = vunpack.c.l.b16 %v97_v46 }
  0x3f   :  { %3905 = vmatpush.bf16.msrb.mxu1 %v6434_v51  ;;  %v6453_v51 = vld [vmem:[#allocation6 + $0x200] sm:$0xff] }
  0x40   :  { %3918 = vmatpush.bf16.msrb.mxu2 %v6442_v52  ;;  %v6461_v52 = vld [vmem:[#allocation6 + $0x240] sm:$0xff] }
  0x41   :  { %3931 = vmatpush.bf16.msrb.mxu3 %v6450_v53  ;;  %v1043_v53 = vunpack.c.l.b16 %v98_v48 }
  0x42   :  { %3893 = vmatpush.bf16.msrb.mxu0 %v6425_v54  ;;  %v6469_v54 = vld [vmem:[#allocation6 + $0x280] sm:$0xff] }
  0x43   :  { %3906 = vmatpush.bf16.msrb.mxu1 %v6433_v55  ;;  %v6492_v55 = vld [vmem:[#allocation6 + $0x338] sm:$0xff] }
  0x44   :  { %3919 = vmatpush.bf16.msrb.mxu2 %v6441_v56  ;;  %v1042_v56 = vunpack.c.h.b16 %v97_v46  ;;  %v6539_v46 = vld [vmem:[#allocation6 + $0x4b0] sm:$0xff] }
  0x45   :  { %3932 = vmatpush.bf16.msrb.mxu3 %v6449_v57  ;;  %v6500_v57 = vld [vmem:[#allocation6 + $0x378] sm:$0xff] }
  0x46   :  { %3894 = vmatpush.bf16.msrb.mxu0 %v6424_v58  ;;  %v6508_v58 = vld [vmem:[#allocation6 + $0x3b8] sm:$0xff] }
  0x47   :  { %3907 = vmatpush.bf16.msrb.mxu1 %v6432_v59  ;;  %v1044_v59 = vunpack.c.h.b16 %v98_v48  ;;  %v6522_v48 = vld [vmem:[#allocation6 + $0x428] sm:$0xff] }
  0x48   :  { %3920 = vmatpush.bf16.msrb.mxu2 %v6440_v60  ;;  %v6477_v60 = vld [vmem:[#allocation6 + $0x2c0] sm:$0xff] }
  0x49   :  { %3933 = vmatpush.bf16.msrb.mxu3 %v6448_v61  ;;  %v1096_v61 = vpack.c.b16 %v1041_v50, %v1041_v50  ;;  %v6538_v50 = vld [vmem:[#allocation6 + $0x4a8] sm:$0xff] }
  0x4a   :  { %3895 = vmatpush.bf16.msrb.mxu0 %v6423_v62  ;;  %v1098_v62 = vpack.c.b16 %v1043_v53, %v1043_v53  ;;  %v6529_v53 = vld [vmem:[#allocation6 + $0x460] sm:$0xff] }
  0x4b   :  { %3908 = vmatpush.bf16.msrb.mxu1 %v6431_v63  ;;  %v6516_v63 = vld [vmem:[#allocation6 + $0x3f8] sm:$0xff] }
  0x4c   :  { %3921 = vmatpush.bf16.msrb.mxu2 %v6439_v0  ;;  %v1097_v0 = vpack.c.b16 %v1042_v56, %v1042_v56  ;;  %v6520_v56 = vld [vmem:[#allocation6 + $0x418] sm:$0xff] }
  0x4d   :  { %3934 = vmatpush.bf16.msrb.mxu3 %v6447_v1  ;;  %v6491_v1 = vld [vmem:[#allocation6 + $0x330] sm:$0xff] }
  0x4e   :  { %3896 = vmatpush.bf16.msrb.mxu0 %v6422_v2  ;;  %v1099_v2 = vpack.c.b16 %v1044_v59, %v1044_v59  ;;  %v6544_v59 = vld [vmem:[#allocation6 + $0x4d8] sm:$0xff] }
  0x4f   :  { %3909 = vmatpush.bf16.msrb.mxu1 %v6430_v3  ;;  %v6499_v3 = vld [vmem:[#allocation6 + $0x370] sm:$0xff] }
  0x50   :  { %3922 = vmatpush.bf16.msrb.mxu2 %v6438_v4  ;;  %v6507_v4 = vld [vmem:[#allocation6 + $0x3b0] sm:$0xff] }
  0x51   :  { %3935 = vmatpush.bf16.msrb.mxu3 %v6446_v7  ;;  %v6498_v7 = vld [vmem:[#allocation6 + $0x368] sm:$0xff] }
  0x52   :  { %3897 = vmatpush.bf16.msrb.mxu0 %v6421_v8  ;;  %v6506_v8 = vld [vmem:[#allocation6 + $0x3a8] sm:$0xff] }
  0x53   :  { %3910 = vmatpush.bf16.msrb.mxu1 %v6429_v10  ;;  %v6489_v10 = vld [vmem:[#allocation6 + $0x320] sm:$0xff] }
  0x54   :  { %3923 = vmatpush.bf16.msrb.mxu2 %v6437_v11  ;;  %v6497_v11 = vld [vmem:[#allocation6 + $0x360] sm:$0xff] }
  0x55   :  { %3936 = vmatpush.bf16.msrb.mxu3 %v6445_v17  ;;  %3898 = vmatmul.bf16.vlgmr.msrb.gmra.mxu0 %v1092_v21  ;;  %v6512_v17 = vld [vmem:[#allocation6 + $0x3d8] sm:$0xff]  ;;  %v6511_v21 = vld [vmem:[#allocation6 + $0x3d0] sm:$0xff] }
  0x56   :  { %3942 = vmatpush.bf16.msra.mxu0 %v6460_v14  ;;  %3911 = vmatmul.bf16.vlgmr.msrb.gmra.mxu1 %v1093_v22  ;;  %v6488_v14 = vld [vmem:[#allocation6 + $0x318] sm:$0xff]  ;;  %v6486_v22 = vld [vmem:[#allocation6 + $0x308] sm:$0xff] }
  0x57   :  { %3955 = vmatpush.bf16.msra.mxu1 %v6468_v15  ;;  %3924 = vmatmul.bf16.vlgmr.msrb.gmra.mxu2 %v1094_v20  ;;  %v6496_v15 = vld [vmem:[#allocation6 + $0x358] sm:$0xff]  ;;  %v6503_v20 = vld [vmem:[#allocation6 + $0x390] sm:$0xff] }
  0x58   :  { %3968 = vmatpush.bf16.msra.mxu2 %v6476_v16  ;;  %3937 = vmatmul.bf16.vlgmr.msrb.gmra.mxu3 %v1095_v26  ;;  %v6504_v16 = vld [vmem:[#allocation6 + $0x398] sm:$0xff] }
  0x59   :  { %3981 = vmatpush.bf16.msra.mxu3 %v6484_v19  ;;  %v6495_v19 = vld [vmem:[#allocation6 + $0x350] sm:$0xff] }
  0x5a   :  { %3943 = vmatpush.bf16.msra.mxu0 %v6459_v23  ;;  %v6494_v23 = vld [vmem:[#allocation6 + $0x348] sm:$0xff]  ;;  %v100_v26 = vld [vmem:[#allocation2 + $0x38] sm:$0xff] }
  0x5b   :  { %3956 = vmatpush.bf16.msra.mxu1 %v6467_v24  ;;  %v99_v24 = vld [vmem:[#allocation2 + $0x30] sm:$0xff] }
  0x5c   :  { %3969 = vmatpush.bf16.msra.mxu2 %v6475_v25  ;;  %v6502_v25 = vld [vmem:[#allocation6 + $0x388] sm:$0xff] }
  0x5d   :  { %3982 = vmatpush.bf16.msra.mxu3 %v6483_v27  ;;  %v6510_v27 = vld [vmem:[#allocation6 + $0x3c8] sm:$0xff] }
  0x5e   :  { %3944 = vmatpush.bf16.msra.mxu0 %v6458_v28  ;;  %v6485_v28 = vld [vmem:[#allocation6 + $0x300] sm:$0xff] }
  0x5f   :  { %3957 = vmatpush.bf16.msra.mxu1 %v6466_v29  ;;  %v1045_v29 = vunpack.c.l.b16 %v99_v24 }
  0x60   :  { %3970 = vmatpush.bf16.msra.mxu2 %v6474_v30  ;;  %v6493_v30 = vld [vmem:[#allocation6 + $0x340] sm:$0xff] }
  0x61   :  { %3983 = vmatpush.bf16.msra.mxu3 %v6482_v31  ;;  %v6524_v31 = vld [vmem:[#allocation6 + $0x438] sm:$0xff] }
  0x62   :  { %3945 = vmatpush.bf16.msra.mxu0 %v6457_v32  ;;  %v1047_v32 = vunpack.c.l.b16 %v100_v26 }
  0x63   :  { %3958 = vmatpush.bf16.msra.mxu1 %v6465_v33  ;;  %v1046_v33 = vunpack.c.h.b16 %v99_v24  ;;  %v6571_v24 = vld [vmem:[#allocation6 + $0x5b0] sm:$0xff] }
  0x64   :  { %3971 = vmatpush.bf16.msra.mxu2 %v6473_v34  ;;  %v6501_v34 = vld [vmem:[#allocation6 + $0x380] sm:$0xff] }
  0x65   :  { %3984 = vmatpush.bf16.msra.mxu3 %v6481_v35  ;;  %v6532_v35 = vld [vmem:[#allocation6 + $0x478] sm:$0xff] }
  0x66   :  { %3946 = vmatpush.bf16.msra.mxu0 %v6456_v36  ;;  %v1048_v36 = vunpack.c.h.b16 %v100_v26  ;;  %v6554_v26 = vld [vmem:[#allocation6 + $0x528] sm:$0xff] }
  0x67   :  { %3959 = vmatpush.bf16.msra.mxu1 %v6464_v37  ;;  %v6540_v37 = vld [vmem:[#allocation6 + $0x4b8] sm:$0xff] }
  0x68   :  { %3972 = vmatpush.bf16.msra.mxu2 %v6472_v38  ;;  %v6509_v38 = vld [vmem:[#allocation6 + $0x3c0] sm:$0xff] }
  0x69   :  { %3985 = vmatpush.bf16.msra.mxu3 %v6480_v39  ;;  %v1100_v39 = vpack.c.b16 %v1045_v29, %v1045_v29  ;;  %v6836_v29 = vld [vmem:[#allocation7] ss:$0 sm:$0xff] }
  0x6a   :  { %3947 = vmatpush.bf16.msra.mxu0 %v6455_v40  ;;  %v6548_v40 = vld [vmem:[#allocation6 + $0x4f8] sm:$0xff] }
  0x6b   :  { %3960 = vmatpush.bf16.msra.mxu1 %v6463_v41  ;;  %v1102_v41 = vpack.c.b16 %v1047_v32, %v1047_v32 }
  0x6c   :  { %3973 = vmatpush.bf16.msra.mxu2 %v6471_v42  ;;  %v1101_v42 = vpack.c.b16 %v1046_v33, %v1046_v33  ;;  %v6561_v33 = vld [vmem:[#allocation6 + $0x560] sm:$0xff] }
  0x6d   :  { %3986 = vmatpush.bf16.msra.mxu3 %v6479_v43  ;;  %v1103_v43 = vpack.c.b16 %v1048_v36, %v1048_v36 }
  0x6e   :  { %3948 = vmatpush.bf16.msra.mxu0 %v6454_v44  ;;  %v6523_v44 = vld [vmem:[#allocation6 + $0x430] sm:$0xff] }
  0x6f   :  { %3961 = vmatpush.bf16.msra.mxu1 %v6462_v45  ;;  %v6531_v45 = vld [vmem:[#allocation6 + $0x470] sm:$0xff] }
  0x70   :  { %3974 = vmatpush.bf16.msra.mxu2 %v6470_v47  ;;  %v6547_v47 = vld [vmem:[#allocation6 + $0x4f0] sm:$0xff] }
  0x71   :  { %3987 = vmatpush.bf16.msra.mxu3 %v6478_v49  ;;  %v6530_v49 = vld [vmem:[#allocation6 + $0x468] sm:$0xff] }
  0x72   :  { %3949 = vmatpush.bf16.msra.mxu0 %v6453_v51  ;;  %v6546_v51 = vld [vmem:[#allocation6 + $0x4e8] sm:$0xff] }
  0x73   :  { %3962 = vmatpush.bf16.msra.mxu1 %v6461_v52  ;;  %v6521_v52 = vld [vmem:[#allocation6 + $0x420] sm:$0xff] }
  0x74   :  { %3975 = vmatpush.bf16.msra.mxu2 %v6469_v54  ;;  %v6537_v54 = vld [vmem:[#allocation6 + $0x4a0] sm:$0xff] }
  0x75   :  { %3988 = vmatpush.bf16.msra.mxu3 %v6477_v60  ;;  %3950 = vmatmul.bf16.vlgmr.msra.gmra.mxu0 %v1096_v61  ;;  %v6519_v60 = vld [vmem:[#allocation6 + $0x410] sm:$0xff] }
  0x76   :  { %3994 = vmatpush.bf16.msrb.mxu0 %v6492_v55  ;;  %3963 = vmatmul.bf16.vlgmr.msra.gmra.mxu1 %v1097_v0  ;;  %v6545_v55 = vld [vmem:[#allocation6 + $0x4e0] sm:$0xff]  ;;  %v6527_v61 = vld [vmem:[#allocation6 + $0x450] sm:$0xff]  ;;  %v6518_v0 = vld [vmem:[#allocation6 + $0x408] sm:$0xff] }
  0x77   :  { %4007 = vmatpush.bf16.msrb.mxu1 %v6500_v57  ;;  %3976 = vmatmul.bf16.vlgmr.msra.gmra.mxu2 %v1098_v62  ;;  %v6528_v57 = vld [vmem:[#allocation6 + $0x458] sm:$0xff]  ;;  %v6535_v62 = vld [vmem:[#allocation6 + $0x490] sm:$0xff] }
  0x78   :  { %4020 = vmatpush.bf16.msrb.mxu2 %v6508_v58  ;;  %3989 = vmatmul.bf16.vlgmr.msra.gmra.mxu3 %v1099_v2  ;;  %v6536_v58 = vld [vmem:[#allocation6 + $0x498] sm:$0xff]  ;;  %v6534_v2 = vld [vmem:[#allocation6 + $0x488] sm:$0xff] }
  0x79   :  { %4033 = vmatpush.bf16.msrb.mxu3 %v6516_v63  ;;  %v6543_v63 = vld [vmem:[#allocation6 + $0x4d0] sm:$0xff] }
  0x7a   :  { %3995 = vmatpush.bf16.msrb.mxu0 %v6491_v1  ;;  %v6526_v1 = vld [vmem:[#allocation6 + $0x448] sm:$0xff] }
  0x7b   :  { %4008 = vmatpush.bf16.msrb.mxu1 %v6499_v3  ;;  %v101_v3 = vld [vmem:[#allocation2 + $0x40] sm:$0xff] }
  0x7c   :  { %4021 = vmatpush.bf16.msrb.mxu2 %v6507_v4  ;;  %v102_v4 = vld [vmem:[#allocation2 + $0x48] sm:$0xff] }
  0x7d   :  { %4034 = vmatpush.bf16.msrb.mxu3 %v6515_v5  ;;  %v6542_v5 = vld [vmem:[#allocation6 + $0x4c8] sm:$0xff] }
  0x7e   :  { %3996 = vmatpush.bf16.msrb.mxu0 %v6490_v6  ;;  %v6517_v6 = vld [vmem:[#allocation6 + $0x400] sm:$0xff] }
  0x7f   :  { %4009 = vmatpush.bf16.msrb.mxu1 %v6498_v7  ;;  %v1049_v7 = vunpack.c.l.b16 %v101_v3 }
  0x80   :  { %4022 = vmatpush.bf16.msrb.mxu2 %v6506_v8  ;;  %v1051_v8 = vunpack.c.l.b16 %v102_v4 }
  0x81   :  { %4035 = vmatpush.bf16.msrb.mxu3 %v6514_v9  ;;  %v6525_v9 = vld [vmem:[#allocation6 + $0x440] sm:$0xff] }
  0x82   :  { %3997 = vmatpush.bf16.msrb.mxu0 %v6489_v10  ;;  %v6533_v10 = vld [vmem:[#allocation6 + $0x480] sm:$0xff] }
  0x83   :  { %4010 = vmatpush.bf16.msrb.mxu1 %v6497_v11  ;;  %v1050_v11 = vunpack.c.h.b16 %v101_v3  ;;  %v6596_v3 = vld [vmem:[#allocation6 + $0x678] sm:$0xff] }
  0x84   :  { %4023 = vmatpush.bf16.msrb.mxu2 %v6505_v12  ;;  %v6556_v12 = vld [vmem:[#allocation6 + $0x538] sm:$0xff] }
  0x85   :  { %4036 = vmatpush.bf16.msrb.mxu3 %v6513_v13  ;;  %v6564_v13 = vld [vmem:[#allocation6 + $0x578] sm:$0xff] }
  0x86   :  { %3998 = vmatpush.bf16.msrb.mxu0 %v6488_v14  ;;  %v1052_v14 = vunpack.c.h.b16 %v102_v4 }
  0x87   :  { %4011 = vmatpush.bf16.msrb.mxu1 %v6496_v15  ;;  %v6572_v15 = vld [vmem:[#allocation6 + $0x5b8] sm:$0xff] }
  0x88   :  { %4024 = vmatpush.bf16.msrb.mxu2 %v6504_v16  ;;  %v6541_v16 = vld [vmem:[#allocation6 + $0x4c0] sm:$0xff] }
  0x89   :  { %4037 = vmatpush.bf16.msrb.mxu3 %v6512_v17  ;;  %v1104_v17 = vpack.c.b16 %v1049_v7, %v1049_v7  ;;  %v6573_v7 = vld [vmem:[#allocation6 + $0x5c0] sm:$0xff] }
  0x8a   :  { %3999 = vmatpush.bf16.msrb.mxu0 %v6487_v18  ;;  %v1106_v18 = vpack.c.b16 %v1051_v8, %v1051_v8 }
  0x8b   :  { %4012 = vmatpush.bf16.msrb.mxu1 %v6495_v19  ;;  %v6580_v19 = vld [vmem:[#allocation6 + $0x5f8] sm:$0xff] }
  0x8c   :  { %4025 = vmatpush.bf16.msrb.mxu2 %v6503_v20  ;;  %v1105_v20 = vpack.c.b16 %v1050_v11, %v1050_v11 }
  0x8d   :  { %4038 = vmatpush.bf16.msrb.mxu3 %v6511_v21  ;;  %v1107_v21 = vpack.c.b16 %v1052_v14, %v1052_v14  ;;  %v6595_v14 = vld [vmem:[#allocation6 + $0x670] sm:$0xff] }
  0x8e   :  { %4000 = vmatpush.bf16.msrb.mxu0 %v6486_v22  ;;  %v6555_v22 = vld [vmem:[#allocation6 + $0x530] sm:$0xff] }
  0x8f   :  { %4013 = vmatpush.bf16.msrb.mxu1 %v6494_v23  ;;  %v6563_v23 = vld [vmem:[#allocation6 + $0x570] sm:$0xff] }
  0x90   :  { %4026 = vmatpush.bf16.msrb.mxu2 %v6502_v25  ;;  %v6579_v25 = vld [vmem:[#allocation6 + $0x5f0] sm:$0xff] }
  0x91   :  { %4039 = vmatpush.bf16.msrb.mxu3 %v6510_v27  ;;  %v6562_v27 = vld [vmem:[#allocation6 + $0x568] sm:$0xff] }
  0x92   :  { %4001 = vmatpush.bf16.msrb.mxu0 %v6485_v28  ;;  %v6570_v28 = vld [vmem:[#allocation6 + $0x5a8] sm:$0xff] }
  0x93   :  { %4014 = vmatpush.bf16.msrb.mxu1 %v6493_v30  ;;  %v6578_v30 = vld [vmem:[#allocation6 + $0x5e8] sm:$0xff] }
  0x94   :  { %4027 = vmatpush.bf16.msrb.mxu2 %v6501_v34  ;;  %v6569_v34 = vld [vmem:[#allocation6 + $0x5a0] sm:$0xff] }
  0x95   :  { %4040 = vmatpush.bf16.msrb.mxu3 %v6509_v38  ;;  %4002 = vmatmul.bf16.vlgmr.msrb.gmra.mxu0 %v1100_v39  ;;  %v6552_v39 = vld [vmem:[#allocation6 + $0x518] sm:$0xff] }
  0x96   :  { %4046 = vmatpush.bf16.msra.mxu0 %v6524_v31  ;;  %4015 = vmatmul.bf16.vlgmr.msrb.gmra.mxu1 %v1101_v42  ;;  %v6553_v31 = vld [vmem:[#allocation6 + $0x520] sm:$0xff]  ;;  %v6576_v42 = vld [vmem:[#allocation6 + $0x5d8] sm:$0xff] }
  0x97   :  { %4059 = vmatpush.bf16.msra.mxu1 %v6532_v35  ;;  %4028 = vmatmul.bf16.vlgmr.msrb.gmra.mxu2 %v1102_v41  ;;  %v6568_v41 = vld [vmem:[#allocation6 + $0x598] sm:$0xff] }
  0x98   :  { %4072 = vmatpush.bf16.msra.mxu2 %v6540_v37  ;;  %4041 = vmatmul.bf16.vlgmr.msrb.gmra.mxu3 %v1103_v43  ;;  %v6577_v37 = vld [vmem:[#allocation6 + $0x5e0] sm:$0xff] }
  0x99   :  { %4085 = vmatpush.bf16.msra.mxu3 %v6548_v40  ;;  %v6560_v40 = vld [vmem:[#allocation6 + $0x558] sm:$0xff] }
  0x9a   :  { %4047 = vmatpush.bf16.msra.mxu0 %v6523_v44  ;;  %v6551_v44 = vld [vmem:[#allocation6 + $0x510] sm:$0xff] }
  0x9b   :  { %4060 = vmatpush.bf16.msra.mxu1 %v6531_v45 }
  0x9c   :  { %4073 = vmatpush.bf16.msra.mxu2 %v6539_v46 }
  0x9d   :  { %4086 = vmatpush.bf16.msra.mxu3 %v6547_v47  ;;  %v6559_v47 = vld [vmem:[#allocation6 + $0x550] sm:$0xff] }
  0x9e   :  { %4048 = vmatpush.bf16.msra.mxu0 %v6522_v48  ;;  %v6567_v48 = vld [vmem:[#allocation6 + $0x590] sm:$0xff] }
  0x9f   :  { %4061 = vmatpush.bf16.msra.mxu1 %v6530_v49 }
  0xa0   :  { %4074 = vmatpush.bf16.msra.mxu2 %v6538_v50 }
  0xa1   :  { %4087 = vmatpush.bf16.msra.mxu3 %v6546_v51  ;;  %v6575_v51 = vld [vmem:[#allocation6 + $0x5d0] sm:$0xff] }
  0xa2   :  { %4049 = vmatpush.bf16.msra.mxu0 %v6521_v52 }
  0xa3   :  { %4062 = vmatpush.bf16.msra.mxu1 %v6529_v53  ;;  %v6550_v53 = vld [vmem:[#allocation6 + $0x508] sm:$0xff] }
  0xa4   :  { %4075 = vmatpush.bf16.msra.mxu2 %v6537_v54  ;;  %v6558_v54 = vld [vmem:[#allocation6 + $0x548] sm:$0xff] }
  0xa5   :  { %4088 = vmatpush.bf16.msra.mxu3 %v6545_v55  ;;  %v6566_v55 = vld [vmem:[#allocation6 + $0x588] sm:$0xff] }
  0xa6   :  { %4050 = vmatpush.bf16.msra.mxu0 %v6520_v56  ;;  %v103_v56 = vld [vmem:[#allocation2 + $0x50] sm:$0xff] }
  0xa7   :  { %4063 = vmatpush.bf16.msra.mxu1 %v6528_v57  ;;  %v104_v57 = vld [vmem:[#allocation2 + $0x58] sm:$0xff] }
  0xa8   :  { %4076 = vmatpush.bf16.msra.mxu2 %v6536_v58  ;;  %v6574_v58 = vld [vmem:[#allocation6 + $0x5c8] sm:$0xff]  ;;  %v1056_v4 = vunpack.c.h.b16 %v104_v57 }
  0xa9   :  { %4089 = vmatpush.bf16.msra.mxu3 %v6544_v59 }
  0xaa   :  { %4051 = vmatpush.bf16.msra.mxu0 %v6519_v60  ;;  %v6549_v60 = vld [vmem:[#allocation6 + $0x500] sm:$0xff] }
  0xab   :  { %4064 = vmatpush.bf16.msra.mxu1 %v6527_v61  ;;  %v1053_v61 = vunpack.c.l.b16 %v103_v56 }
  0xac   :  { %4077 = vmatpush.bf16.msra.mxu2 %v6535_v62  ;;  %v1055_v62 = vunpack.c.l.b16 %v104_v57  ;;  %v6628_v57 = vld [vmem:[#allocation6 + $0x778] sm:$0xff] }
  0xad   :  { %4090 = vmatpush.bf16.msra.mxu3 %v6543_v63  ;;  %v6557_v63 = vld [vmem:[#allocation6 + $0x540] sm:$0xff]  ;;  %v1108_v8 = vpack.c.b16 %v1053_v61, %v1053_v61 }
  0xae   :  { %4052 = vmatpush.bf16.msra.mxu0 %v6518_v0  ;;  %v6565_v0 = vld [vmem:[#allocation6 + $0x580] sm:$0xff] }
  0xaf   :  { %4065 = vmatpush.bf16.msra.mxu1 %v6526_v1  ;;  %v1054_v1 = vunpack.c.h.b16 %v103_v56  ;;  %v6620_v56 = vld [vmem:[#allocation6 + $0x738] sm:$0xff] }
  0xb0   :  { %4078 = vmatpush.bf16.msra.mxu2 %v6534_v2  ;;  %v6588_v2 = vld [vmem:[#allocation6 + $0x638] sm:$0xff] }
  0xb1   :  { %4091 = vmatpush.bf16.msra.mxu3 %v6542_v5  ;;  %v1109_v11 = vpack.c.b16 %v1054_v1, %v1054_v1 }
  0xb2   :  { %4053 = vmatpush.bf16.msra.mxu0 %v6517_v6  ;;  %v3847_v32 = vpop.f32.mrf.mxu0  ;;  %v6604_v6 = vld [vmem:[#allocation6 + $0x6b8] sm:$0xff] }
  0xb3   :  { %4066 = vmatpush.bf16.msra.mxu1 %v6525_v9  ;;  %v3848_v35 = vadd.f32 %v6836_v29, %v3847_v32  ;;  %v3860_v36 = vpop.f32.mrf.mxu1  ;;  %v1110_v9 = vpack.c.b16 %v1055_v62, %v1055_v62 }
  0xb4   :  { %4079 = vmatpush.bf16.msra.mxu2 %v6533_v10  ;;  %v6612_v10 = vld [vmem:[#allocation6 + $0x6f8] sm:$0xff] }
  0xb5   :  { %4092 = vmatpush.bf16.msra.mxu3 %v6541_v16  ;;  %4054 = vmatmul.bf16.vlgmr.msra.gmra.mxu0 %v1104_v17  ;;  %v3861_v38 = vadd.f32 %v3860_v36, %v3848_v35  ;;  %v6611_v16 = vld [vmem:[#allocation6 + $0x6f0] sm:$0xff]  ;;  %v6586_v17 = vld [vmem:[#allocation6 + $0x628] sm:$0xff] }
  0xb6   :  { %4098 = vmatpush.bf16.msrb.mxu0 %v6556_v12  ;;  %4067 = vmatmul.bf16.vlgmr.msra.gmra.mxu1 %v1105_v20  ;;  %v1111_v12 = vpack.c.b16 %v1056_v4, %v1056_v4  ;;  %v6610_v20 = vld [vmem:[#allocation6 + $0x6e8] sm:$0xff]  ;;  %v6583_v35 = vld [vmem:[#allocation6 + $0x610] sm:$0xff] }
  0xb7   :  { %4111 = vmatpush.bf16.msrb.mxu1 %v6564_v13  ;;  %4080 = vmatmul.bf16.vlgmr.msra.gmra.mxu2 %v1106_v18  ;;  %v6587_v13 = vld [vmem:[#allocation6 + $0x630] sm:$0xff]  ;;  %v6594_v18 = vld [vmem:[#allocation6 + $0x668] sm:$0xff] }
  0xb8   :  { %4124 = vmatpush.bf16.msrb.mxu2 %v6572_v15  ;;  %4093 = vmatmul.bf16.vlgmr.msra.gmra.mxu3 %v1107_v21  ;;  %v6603_v15 = vld [vmem:[#allocation6 + $0x6b0] sm:$0xff]  ;;  %v6585_v21 = vld [vmem:[#allocation6 + $0x620] sm:$0xff] }
  0xb9   :  { %4137 = vmatpush.bf16.msrb.mxu3 %v6580_v19  ;;  %v6602_v19 = vld [vmem:[#allocation6 + $0x6a8] sm:$0xff]  ;;  %v6591_v36 = vld [vmem:[#allocation6 + $0x650] sm:$0xff] }
  0xba   :  { %4099 = vmatpush.bf16.msrb.mxu0 %v6555_v22  ;;  %v3873_v43 = vpop.f32.mrf.mxu2  ;;  %v3849_v46 = vpop.f32.mrf.mxu0  ;;  %v6593_v22 = vld [vmem:[#allocation6 + $0x660] sm:$0xff]  ;;  %v6635_v4 = vld [vmem:[#allocation6 + $0x7b0] sm:$0xff] }
  0xbb   :  { %4112 = vmatpush.bf16.msrb.mxu1 %v6563_v23  ;;  %v3874_v45 = vadd.f32 %v3873_v43, %v3861_v38  ;;  %v3886_v49 = vpop.f32.mrf.mxu3  ;;  %v3862_v50 = vpop.f32.mrf.mxu1  ;;  %v6601_v23 = vld [vmem:[#allocation6 + $0x6a0] sm:$0xff]  ;;  %v6590_v43 = vld [vmem:[#allocation6 + $0x648] sm:$0xff] }
  0xbc   :  { %4125 = vmatpush.bf16.msrb.mxu2 %v6571_v24  ;;  %v106_v46 = vld [vmem:[#allocation2 + $0x68] sm:$0xff] }
  0xbd   :  { %4138 = vmatpush.bf16.msrb.mxu3 %v6579_v25  ;;  %v7025_v52 = vadd.f32 %v3886_v49, %v3874_v45  ;;  %v105_v45 = vld [vmem:[#allocation2 + $0x60] sm:$0xff] }
  0xbe   :  { %4100 = vmatpush.bf16.msrb.mxu0 %v6554_v26  ;;  %v6581_v49 = vld [vmem:[#allocation6 + $0x600] sm:$0xff]  ;;  %v1057_v50 = vunpack.c.l.b16 %v105_v45 }
  0xbf   :  { %4113 = vmatpush.bf16.msrb.mxu1 %v6562_v27  ;;  %v6609_v27 = vld [vmem:[#allocation6 + $0x6e0] sm:$0xff] }
  0xc0   :  { %4126 = vmatpush.bf16.msrb.mxu2 %v6570_v28  ;;  %v6584_v28 = vld [vmem:[#allocation6 + $0x618] sm:$0xff]  ;;  %v1112_v61 = vpack.c.b16 %v1057_v50, %v1057_v50 }
  0xc1   :  { %4139 = vmatpush.bf16.msrb.mxu3 %v6578_v30  ;;  %v6592_v30 = vld [vmem:[#allocation6 + $0x658] sm:$0xff] }
  0xc2   :  { %4101 = vmatpush.bf16.msrb.mxu0 %v6553_v31  ;;  %v3875_v59 = vpop.f32.mrf.mxu2  ;;  %v6600_v31 = vld [vmem:[#allocation6 + $0x698] sm:$0xff] }
  0xc3   :  { %4114 = vmatpush.bf16.msrb.mxu1 %v6561_v33  ;;  %v3888_v5 = vpop.f32.mrf.mxu3  ;;  %v6608_v33 = vld [vmem:[#allocation6 + $0x6d8] sm:$0xff] }
  0xc4   :  { %4127 = vmatpush.bf16.msrb.mxu2 %v6569_v34  ;;  %v6636_v59 = vld [vmem:[#allocation6 + $0x7b8] sm:$0xff]  ;;  %v6643_v5 = vld [vmem:[#allocation6 + $0x7f0] sm:$0xff] }
  0xc5   :  { %4140 = vmatpush.bf16.msrb.mxu3 %v6577_v37  ;;  %v6599_v37 = vld [vmem:[#allocation6 + $0x690] sm:$0xff]  ;;  %v6668_v50 = vld [vmem:[#allocation6 + $0x8b8] sm:$0xff] }
  0xc6   :  { %4102 = vmatpush.bf16.msrb.mxu0 %v6552_v39 }
  0xc7   :  { %4115 = vmatpush.bf16.msrb.mxu1 %v6560_v40 }
  0xc8   :  { %4128 = vmatpush.bf16.msrb.mxu2 %v6568_v41  ;;  %v6607_v41 = vld [vmem:[#allocation6 + $0x6d0] sm:$0xff] }
  0xc9   :  { %4141 = vmatpush.bf16.msrb.mxu3 %v6576_v42  ;;  %v6582_v42 = vld [vmem:[#allocation6 + $0x608] sm:$0xff] }
  0xca   :  { %4103 = vmatpush.bf16.msrb.mxu0 %v6551_v44  ;;  %v6598_v44 = vld [vmem:[#allocation6 + $0x688] sm:$0xff] }
  0xcb   :  { %4116 = vmatpush.bf16.msrb.mxu1 %v6559_v47 }
  0xcc   :  { %4129 = vmatpush.bf16.msrb.mxu2 %v6567_v48  ;;  %v6606_v48 = vld [vmem:[#allocation6 + $0x6c8] sm:$0xff] }
  0xcd   :  { %4142 = vmatpush.bf16.msrb.mxu3 %v6575_v51  ;;  %v1059_v51 = vunpack.c.l.b16 %v106_v46 }
  0xce   :  { %4104 = vmatpush.bf16.msrb.mxu0 %v6550_v53  ;;  %v6597_v53 = vld [vmem:[#allocation6 + $0x680] sm:$0xff] }
  0xcf   :  { %4117 = vmatpush.bf16.msrb.mxu1 %v6558_v54  ;;  %v1058_v54 = vunpack.c.h.b16 %v105_v45  ;;  %v1114_v62 = vpack.c.b16 %v1059_v51, %v1059_v51  ;;  %v6629_v45 = vld [vmem:[#allocation6 + $0x780] sm:$0xff] }
  0xd0   :  { %4130 = vmatpush.bf16.msrb.mxu2 %v6566_v55  ;;  %v6637_v51 = vld [vmem:[#allocation6 + $0x7c0] sm:$0xff] }
  0xd1   :  { %4143 = vmatpush.bf16.msrb.mxu3 %v6574_v58  ;;  %v1060_v58 = vunpack.c.h.b16 %v106_v46 }
  0xd2   :  { %4105 = vmatpush.bf16.msrb.mxu0 %v6549_v60  ;;  %v3899_v24 = vpop.f32.mrf.mxu0  ;;  %v6605_v60 = vld [vmem:[#allocation6 + $0x6c0] sm:$0xff] }
  0xd3   :  { %4118 = vmatpush.bf16.msrb.mxu1 %v6557_v63  ;;  %v3912_v25 = vpop.f32.mrf.mxu1  ;;  %v3900_v26 = vadd.f32 %v3899_v24, %v7025_v52  ;;  %v6589_v52 = vld [vmem:[#allocation6 + $0x640] sm:$0xff]  ;;  %v6644_v63 = vld [vmem:[#allocation6 + $0x7f8] sm:$0xff]  ;;  %v1115_v1 = vpack.c.b16 %v1060_v58, %v1060_v58  ;;  %v6659_v58 = vld [vmem:[#allocation6 + $0x870] sm:$0xff] }
  0xd4   :  { %4131 = vmatpush.bf16.msrb.mxu2 %v6565_v0  ;;  %v1113_v0 = vpack.c.b16 %v1058_v54, %v1058_v54  ;;  %v6640_v24 = vld [vmem:[#allocation6 + $0x7d8] sm:$0xff] }
  0xd5   :  { %4144 = vmatpush.bf16.msrb.mxu3 %v6573_v7  ;;  %4106 = vmatmul.bf16.vlgmr.msrb.gmra.mxu0 %v1108_v8  ;;  %v3913_v29 = vadd.f32 %v3912_v25, %v3900_v26  ;;  %v6626_v7 = vld [vmem:[#allocation6 + $0x768] sm:$0xff]  ;;  %v6676_v54 = vld [vmem:[#allocation6 + $0x8f8] sm:$0xff] }
  0xd6   :  { %4150 = vmatpush.bf16.msra.mxu0 %v6588_v2  ;;  %4119 = vmatmul.bf16.vlgmr.msrb.gmra.mxu1 %v1109_v11  ;;  %v6619_v2 = vld [vmem:[#allocation6 + $0x730] sm:$0xff]  ;;  %v6634_v8 = vld [vmem:[#allocation6 + $0x7a8] sm:$0xff] }
  0xd7   :  { %4163 = vmatpush.bf16.msra.mxu1 %v6596_v3  ;;  %4132 = vmatmul.bf16.vlgmr.msrb.gmra.mxu2 %v1110_v9  ;;  %v6627_v3 = vld [vmem:[#allocation6 + $0x770] sm:$0xff] }
  0xd8   :  { %4176 = vmatpush.bf16.msra.mxu2 %v6604_v6  ;;  %4145 = vmatmul.bf16.vlgmr.msrb.gmra.mxu3 %v1111_v12  ;;  %v6618_v6 = vld [vmem:[#allocation6 + $0x728] sm:$0xff] }
  0xd9   :  { %4189 = vmatpush.bf16.msra.mxu3 %v6612_v10  ;;  %v6642_v10 = vld [vmem:[#allocation6 + $0x7e8] sm:$0xff] }
  0xda   :  { %4151 = vmatpush.bf16.msra.mxu0 %v6587_v13  ;;  %v3925_v32 = vpop.f32.mrf.mxu2  ;;  %v3901_v39 = vpop.f32.mrf.mxu0  ;;  %v6617_v13 = vld [vmem:[#allocation6 + $0x720] sm:$0xff] }
  0xdb   :  { %4164 = vmatpush.bf16.msra.mxu1 %v6595_v14  ;;  %v7028_v34 = vadd.f32 %v3925_v32, %v3913_v29  ;;  %v3938_v38 = vpop.f32.mrf.mxu3  ;;  %v3914_v40 = vpop.f32.mrf.mxu1  ;;  %v6625_v14 = vld [vmem:[#allocation6 + $0x760] sm:$0xff]  ;;  %v6623_v29 = vld [vmem:[#allocation6 + $0x750] sm:$0xff]  ;;  %v6638_v39 = vld [vmem:[#allocation6 + $0x7c8] sm:$0xff] }
  0xdc   :  { %4177 = vmatpush.bf16.msra.mxu2 %v6603_v15  ;;  %v6633_v15 = vld [vmem:[#allocation6 + $0x7a0] sm:$0xff]  ;;  %v6639_v32 = vld [vmem:[#allocation6 + $0x7d0] sm:$0xff] }
  0xdd   :  { %4190 = vmatpush.bf16.msra.mxu3 %v6611_v16  ;;  %v3939_v9 = vadd.f32 %v3938_v38, %v7028_v34  ;;  %v6622_v34 = vld [vmem:[#allocation6 + $0x748] sm:$0xff]  ;;  %v6613_v40 = vld [vmem:[#allocation6 + $0x700] sm:$0xff] }
  0xde   :  { %4152 = vmatpush.bf16.msra.mxu0 %v6586_v17 }
  0xdf   :  { %4165 = vmatpush.bf16.msra.mxu1 %v6594_v18  ;;  %v6641_v18 = vld [vmem:[#allocation6 + $0x7e0] sm:$0xff] }
  0xe0   :  { %4178 = vmatpush.bf16.msra.mxu2 %v6602_v19  ;;  %v6616_v19 = vld [vmem:[#allocation6 + $0x718] sm:$0xff] }
  0xe1   :  { %4191 = vmatpush.bf16.msra.mxu3 %v6610_v20  ;;  %v6624_v20 = vld [vmem:[#allocation6 + $0x758] sm:$0xff] }
  0xe2   :  { %4153 = vmatpush.bf16.msra.mxu0 %v6585_v21  ;;  %v3927_v47 = vpop.f32.mrf.mxu2  ;;  %v6632_v21 = vld [vmem:[#allocation6 + $0x798] sm:$0xff] }
  0xe3   :  { %4166 = vmatpush.bf16.msra.mxu1 %v6593_v22  ;;  %v3940_v55 = vpop.f32.mrf.mxu3  ;;  %v6652_v47 = vld [vmem:[#allocation6 + $0x838] sm:$0xff] }
  0xe4   :  { %4179 = vmatpush.bf16.msra.mxu2 %v6601_v23 }
  0xe5   :  { %4192 = vmatpush.bf16.msra.mxu3 %v6609_v27  ;;  %v6615_v27 = vld [vmem:[#allocation6 + $0x710] sm:$0xff] }
  0xe6   :  { %4154 = vmatpush.bf16.msra.mxu0 %v6584_v28 }
  0xe7   :  { %4167 = vmatpush.bf16.msra.mxu1 %v6592_v30  ;;  %v6631_v30 = vld [vmem:[#allocation6 + $0x790] sm:$0xff] }
  0xe8   :  { %4180 = vmatpush.bf16.msra.mxu2 %v6600_v31 }
  0xe9   :  { %4193 = vmatpush.bf16.msra.mxu3 %v6608_v33  ;;  %v6614_v33 = vld [vmem:[#allocation6 + $0x708] sm:$0xff] }
  0xea   :  { %4155 = vmatpush.bf16.msra.mxu0 %v6583_v35  ;;  %v6630_v35 = vld [vmem:[#allocation6 + $0x788] sm:$0xff] }
  0xeb   :  { %4168 = vmatpush.bf16.msra.mxu1 %v6591_v36  ;;  %v107_v36 = vld [vmem:[#allocation2 + $0x70] sm:$0xff] }
  0xec   :  { %4181 = vmatpush.bf16.msra.mxu2 %v6599_v37  ;;  %v108_v37 = vld [vmem:[#allocation2 + $0x78] sm:$0xff]  ;;  %v1062_v46 = vunpack.c.h.b16 %v107_v36 }
  0xed   :  { %4194 = vmatpush.bf16.msra.mxu3 %v6607_v41  ;;  %v1061_v41 = vunpack.c.l.b16 %v107_v36 }
  0xee   :  { %4156 = vmatpush.bf16.msra.mxu0 %v6582_v42  ;;  %v1063_v42 = vunpack.c.l.b16 %v108_v37  ;;  %v1117_v55 = vpack.c.b16 %v1062_v46, %v1062_v46 }
  0xef   :  { %4169 = vmatpush.bf16.msra.mxu1 %v6590_v43 }
  0xf0   :  { %4182 = vmatpush.bf16.msra.mxu2 %v6598_v44  ;;  %v6621_v44 = vld [vmem:[#allocation6 + $0x740] sm:$0xff] }
  0xf1   :  { %4195 = vmatpush.bf16.msra.mxu3 %v6606_v48  ;;  %v6660_v48 = vld [vmem:[#allocation6 + $0x878] sm:$0xff] }
  0xf2   :  { %4157 = vmatpush.bf16.msra.mxu0 %v6581_v49  ;;  %v3951_v11 = vpop.f32.mrf.mxu0  ;;  %v1064_v49 = vunpack.c.h.b16 %v108_v37  ;;  %v6684_v37 = vld [vmem:[#allocation6 + $0x938] sm:$0xff] }
  0xf3   :  { %4170 = vmatpush.bf16.msra.mxu1 %v6589_v52  ;;  %v3952_v12 = vadd.f32 %v3951_v11, %v3939_v9  ;;  %v3964_v16 = vpop.f32.mrf.mxu1  ;;  %v1116_v52 = vpack.c.b16 %v1061_v41, %v1061_v41  ;;  %v6648_v9 = vld [vmem:[#allocation6 + $0x818] sm:$0xff]  ;;  %v6669_v41 = vld [vmem:[#allocation6 + $0x8c0] sm:$0xff] }
  0xf4   :  { %4183 = vmatpush.bf16.msra.mxu2 %v6597_v53  ;;  %v1118_v53 = vpack.c.b16 %v1063_v42, %v1063_v42  ;;  %v6664_v11 = vld [vmem:[#allocation6 + $0x898] sm:$0xff] }
  0xf5   :  { %4196 = vmatpush.bf16.msra.mxu3 %v6605_v60  ;;  %4158 = vmatmul.bf16.vlgmr.msra.gmra.mxu0 %v1112_v61  ;;  %v3965_v17 = vadd.f32 %v3964_v16, %v3952_v12  ;;  %v6675_v60 = vld [vmem:[#allocation6 + $0x8f0] sm:$0xff]  ;;  %v6650_v61 = vld [vmem:[#allocation6 + $0x828] sm:$0xff] }
  0xf6   :  { %4202 = vmatpush.bf16.msrb.mxu0 %v6620_v56  ;;  %4171 = vmatmul.bf16.vlgmr.msra.gmra.mxu1 %v1113_v0  ;;  %v1119_v56 = vpack.c.b16 %v1064_v49, %v1064_v49  ;;  %v6674_v0 = vld [vmem:[#allocation6 + $0x8e8] sm:$0xff]  ;;  %v6699_v49 = vld [vmem:[#allocation6 + $0x9b0] sm:$0xff] }
  0xf7   :  { %4215 = vmatpush.bf16.msrb.mxu1 %v6628_v57  ;;  %4184 = vmatmul.bf16.vlgmr.msra.gmra.mxu2 %v1114_v62  ;;  %v6651_v57 = vld [vmem:[#allocation6 + $0x830] sm:$0xff]  ;;  %v6658_v62 = vld [vmem:[#allocation6 + $0x868] sm:$0xff] }
  0xf8   :  { %4228 = vmatpush.bf16.msrb.mxu2 %v6636_v59  ;;  %4197 = vmatmul.bf16.vlgmr.msra.gmra.mxu3 %v1115_v1  ;;  %v6667_v59 = vld [vmem:[#allocation6 + $0x8b0] sm:$0xff] }
  0xf9   :  { %4241 = vmatpush.bf16.msrb.mxu3 %v6644_v63  ;;  %v6666_v63 = vld [vmem:[#allocation6 + $0x8a8] sm:$0xff] }
  0xfa   :  { %4203 = vmatpush.bf16.msrb.mxu0 %v6619_v2  ;;  %v3977_v22 = vpop.f32.mrf.mxu2  ;;  %v3953_v25 = vpop.f32.mrf.mxu0 }
  0xfb   :  { %4216 = vmatpush.bf16.msrb.mxu1 %v6627_v3  ;;  %v3978_v23 = vadd.f32 %v3977_v22, %v3965_v17  ;;  %v3990_v26 = vpop.f32.mrf.mxu3  ;;  %v3966_v31 = vpop.f32.mrf.mxu1  ;;  %v6649_v3 = vld [vmem:[#allocation6 + $0x820] sm:$0xff]  ;;  %v6647_v17 = vld [vmem:[#allocation6 + $0x810] sm:$0xff]  ;;  %v6662_v25 = vld [vmem:[#allocation6 + $0x888] sm:$0xff] }
  0xfc   :  { %4229 = vmatpush.bf16.msrb.mxu2 %v6635_v4  ;;  %v6671_v22 = vld [vmem:[#allocation6 + $0x8d0] sm:$0xff]  ;;  %v6645_v31 = vld [vmem:[#allocation6 + $0x800] sm:$0xff] }
  0xfd   :  { %4242 = vmatpush.bf16.msrb.mxu3 %v6643_v5  ;;  %v7031_v28 = vadd.f32 %v3990_v26, %v3978_v23  ;;  %v6657_v5 = vld [vmem:[#allocation6 + $0x860] sm:$0xff]  ;;  %v6646_v23 = vld [vmem:[#allocation6 + $0x808] sm:$0xff] }
  0xfe   :  { %4204 = vmatpush.bf16.msrb.mxu0 %v6618_v6  ;;  %v6665_v6 = vld [vmem:[#allocation6 + $0x8a0] sm:$0xff] }
  0xff   :  { %4217 = vmatpush.bf16.msrb.mxu1 %v6626_v7  ;;  %v109_v26 = vld [vmem:[#allocation2 + $0x80] sm:$0xff] }
 0x100   :  { %4230 = vmatpush.bf16.msrb.mxu2 %v6634_v8  ;;  %v6673_v8 = vld [vmem:[#allocation6 + $0x8e0] sm:$0xff]  ;;  %v1066_v36 = vunpack.c.h.b16 %v109_v26 }
 0x101   :  { %4243 = vmatpush.bf16.msrb.mxu3 %v6642_v10  ;;  %v6656_v10 = vld [vmem:[#allocation6 + $0x858] sm:$0xff] }
 0x102   :  { %4205 = vmatpush.bf16.msrb.mxu0 %v6617_v13  ;;  %v3979_v38 = vpop.f32.mrf.mxu2 }
 0x103   :  { %4218 = vmatpush.bf16.msrb.mxu1 %v6625_v14  ;;  %v3992_v43 = vpop.f32.mrf.mxu3  ;;  %v6672_v14 = vld [vmem:[#allocation6 + $0x8d8] sm:$0xff] }
 0x104   :  { %4231 = vmatpush.bf16.msrb.mxu2 %v6633_v15  ;;  %v6692_v38 = vld [vmem:[#allocation6 + $0x978] sm:$0xff] }
 0x105   :  { %4244 = vmatpush.bf16.msrb.mxu3 %v6641_v18 }
 0x106   :  { %4206 = vmatpush.bf16.msrb.mxu0 %v6616_v19 }
 0x107   :  { %4219 = vmatpush.bf16.msrb.mxu1 %v6624_v20  ;;  %v6655_v20 = vld [vmem:[#allocation6 + $0x850] sm:$0xff] }
 0x108   :  { %4232 = vmatpush.bf16.msrb.mxu2 %v6632_v21  ;;  %v6663_v21 = vld [vmem:[#allocation6 + $0x890] sm:$0xff] }
 0x109   :  { %4245 = vmatpush.bf16.msrb.mxu3 %v6640_v24  ;;  %v6654_v24 = vld [vmem:[#allocation6 + $0x848] sm:$0xff] }
 0x10a   :  { %4207 = vmatpush.bf16.msrb.mxu0 %v6615_v27  ;;  %v110_v27 = vld [vmem:[#allocation2 + $0x88] sm:$0xff] }
 0x10b   :  { %4220 = vmatpush.bf16.msrb.mxu1 %v6623_v29  ;;  %v6670_v29 = vld [vmem:[#allocation6 + $0x8c8] sm:$0xff] }
 0x10c   :  { %4233 = vmatpush.bf16.msrb.mxu2 %v6631_v30 }
 0x10d   :  { %4246 = vmatpush.bf16.msrb.mxu3 %v6639_v32  ;;  %v1065_v32 = vunpack.c.l.b16 %v109_v26 }
 0x10e   :  { %4208 = vmatpush.bf16.msrb.mxu0 %v6614_v33  ;;  %v1067_v33 = vunpack.c.l.b16 %v110_v27 }
 0x10f   :  { %4221 = vmatpush.bf16.msrb.mxu1 %v6622_v34  ;;  %v6653_v34 = vld [vmem:[#allocation6 + $0x840] sm:$0xff]  ;;  %v1120_v42 = vpack.c.b16 %v1065_v32, %v1065_v32 }
 0x110   :  { %4234 = vmatpush.bf16.msrb.mxu2 %v6630_v35  ;;  %v6661_v35 = vld [vmem:[#allocation6 + $0x880] sm:$0xff]  ;;  %v1122_v43 = vpack.c.b16 %v1067_v33, %v1067_v33 }
 0x111   :  { %4247 = vmatpush.bf16.msrb.mxu3 %v6638_v39  ;;  %v1068_v39 = vunpack.c.h.b16 %v110_v27  ;;  %v6716_v27 = vld [vmem:[#allocation6 + $0xa38] sm:$0xff] }
 0x112   :  { %4209 = vmatpush.bf16.msrb.mxu0 %v6613_v40  ;;  %v4003_v1 = vpop.f32.mrf.mxu0  ;;  %v6700_v40 = vld [vmem:[#allocation6 + $0x9b8] sm:$0xff] }
 0x113   :  { %4222 = vmatpush.bf16.msrb.mxu1 %v6621_v44  ;;  %v4004_v2 = vadd.f32 %v4003_v1, %v7031_v28  ;;  %v4016_v4 = vpop.f32.mrf.mxu1  ;;  %v6708_v44 = vld [vmem:[#allocation6 + $0x9f8] sm:$0xff]  ;;  %v1123_v46 = vpack.c.b16 %v1068_v39, %v1068_v39  ;;  %v6731_v39 = vld [vmem:[#allocation6 + $0xab0] sm:$0xff] }
 0x114   :  { %4235 = vmatpush.bf16.msrb.mxu2 %v6629_v45  ;;  %v1121_v45 = vpack.c.b16 %v1066_v36, %v1066_v36  ;;  %v6696_v1 = vld [vmem:[#allocation6 + $0x998] sm:$0xff] }
 0x115   :  { %4248 = vmatpush.bf16.msrb.mxu3 %v6637_v51  ;;  %4210 = vmatmul.bf16.vlgmr.msrb.gmra.mxu0 %v1116_v52  ;;  %v4017_v7 = vadd.f32 %v4016_v4, %v4004_v2  ;;  %v6682_v51 = vld [vmem:[#allocation6 + $0x928] sm:$0xff]  ;;  %v6704_v4 = vld [vmem:[#allocation6 + $0x9d8] sm:$0xff] }
 0x116   :  { %4254 = vmatpush.bf16.msra.mxu0 %v6652_v47  ;;  %4223 = vmatmul.bf16.vlgmr.msrb.gmra.mxu1 %v1117_v55  ;;  %v6683_v47 = vld [vmem:[#allocation6 + $0x930] sm:$0xff]  ;;  %v6690_v52 = vld [vmem:[#allocation6 + $0x968] sm:$0xff] }
 0x117   :  { %4267 = vmatpush.bf16.msra.mxu1 %v6660_v48  ;;  %4236 = vmatmul.bf16.vlgmr.msrb.gmra.mxu2 %v1118_v53  ;;  %v6691_v48 = vld [vmem:[#allocation6 + $0x970] sm:$0xff]  ;;  %v6698_v53 = vld [vmem:[#allocation6 + $0x9a8] sm:$0xff] }
 0x118   :  { %4280 = vmatpush.bf16.msra.mxu2 %v6668_v50  ;;  %4249 = vmatmul.bf16.vlgmr.msrb.gmra.mxu3 %v1119_v56  ;;  %v6707_v50 = vld [vmem:[#allocation6 + $0x9f0] sm:$0xff] }
 0x119   :  { %4293 = vmatpush.bf16.msra.mxu3 %v6676_v54  ;;  %v6706_v54 = vld [vmem:[#allocation6 + $0x9e8] sm:$0xff] }
 0x11a   :  { %4255 = vmatpush.bf16.msra.mxu0 %v6651_v57  ;;  %v4029_v12 = vpop.f32.mrf.mxu2  ;;  %v4005_v16 = vpop.f32.mrf.mxu0  ;;  %v6681_v57 = vld [vmem:[#allocation6 + $0x920] sm:$0xff] }
 0x11b   :  { %4268 = vmatpush.bf16.msra.mxu1 %v6659_v58  ;;  %v4030_v13 = vadd.f32 %v4029_v12, %v4017_v7  ;;  %v4042_v15 = vpop.f32.mrf.mxu3  ;;  %v4018_v18 = vpop.f32.mrf.mxu1  ;;  %v6703_v12 = vld [vmem:[#allocation6 + $0x9d0] sm:$0xff] }
 0x11c   :  { %4281 = vmatpush.bf16.msra.mxu2 %v6667_v59  ;;  %v6689_v59 = vld [vmem:[#allocation6 + $0x960] sm:$0xff]  ;;  %v111_v16 = vld [vmem:[#allocation2 + $0x90] sm:$0xff] }
 0x11d   :  { %4294 = vmatpush.bf16.msra.mxu3 %v6675_v60  ;;  %v7034_v19 = vadd.f32 %v4042_v15, %v4030_v13  ;;  %v6697_v60 = vld [vmem:[#allocation6 + $0x9a0] sm:$0xff]  ;;  %v6678_v13 = vld [vmem:[#allocation6 + $0x908] sm:$0xff]  ;;  %v1070_v26 = vunpack.c.h.b16 %v111_v16 }
 0x11e   :  { %4256 = vmatpush.bf16.msra.mxu0 %v6650_v61  ;;  %v6694_v15 = vld [vmem:[#allocation6 + $0x988] sm:$0xff] }
 0x11f   :  { %4269 = vmatpush.bf16.msra.mxu1 %v6658_v62  ;;  %v6705_v62 = vld [vmem:[#allocation6 + $0x9e0] sm:$0xff] }
 0x120   :  { %4282 = vmatpush.bf16.msra.mxu2 %v6666_v63  ;;  %v6680_v63 = vld [vmem:[#allocation6 + $0x918] sm:$0xff] }
 0x121   :  { %4295 = vmatpush.bf16.msra.mxu3 %v6674_v0  ;;  %v6688_v0 = vld [vmem:[#allocation6 + $0x958] sm:$0xff] }
 0x122   :  { %4257 = vmatpush.bf16.msra.mxu0 %v6649_v3  ;;  %v4031_v28 = vpop.f32.mrf.mxu2 }
 0x123   :  { %4270 = vmatpush.bf16.msra.mxu1 %v6657_v5  ;;  %v4044_v30 = vpop.f32.mrf.mxu3  ;;  %v6724_v28 = vld [vmem:[#allocation6 + $0xa78] sm:$0xff] }
 0x124   :  { %4283 = vmatpush.bf16.msra.mxu2 %v6665_v6  ;;  %v6732_v30 = vld [vmem:[#allocation6 + $0xab8] sm:$0xff] }
 0x125   :  { %4296 = vmatpush.bf16.msra.mxu3 %v6673_v8  ;;  %v6679_v8 = vld [vmem:[#allocation6 + $0x910] sm:$0xff] }
 0x126   :  { %4258 = vmatpush.bf16.msra.mxu0 %v6648_v9 }
 0x127   :  { %4271 = vmatpush.bf16.msra.mxu1 %v6656_v10  ;;  %v6687_v10 = vld [vmem:[#allocation6 + $0x950] sm:$0xff] }
 0x128   :  { %4284 = vmatpush.bf16.msra.mxu2 %v6664_v11  ;;  %v6695_v11 = vld [vmem:[#allocation6 + $0x990] sm:$0xff] }
 0x129   :  { %4297 = vmatpush.bf16.msra.mxu3 %v6672_v14  ;;  %v6686_v14 = vld [vmem:[#allocation6 + $0x948] sm:$0xff] }
 0x12a   :  { %4259 = vmatpush.bf16.msra.mxu0 %v6647_v17  ;;  %v112_v17 = vld [vmem:[#allocation2 + $0x98] sm:$0xff] }
 0x12b   :  { %4272 = vmatpush.bf16.msra.mxu1 %v6655_v20 }
 0x12c   :  { %4285 = vmatpush.bf16.msra.mxu2 %v6663_v21  ;;  %v6677_v21 = vld [vmem:[#allocation6 + $0x900] sm:$0xff] }
 0x12d   :  { %4298 = vmatpush.bf16.msra.mxu3 %v6671_v22  ;;  %v1069_v22 = vunpack.c.l.b16 %v111_v16 }
 0x12e   :  { %4260 = vmatpush.bf16.msra.mxu0 %v6646_v23  ;;  %v1071_v23 = vunpack.c.l.b16 %v112_v17 }
 0x12f   :  { %4273 = vmatpush.bf16.msra.mxu1 %v6654_v24  ;;  %v6685_v24 = vld [vmem:[#allocation6 + $0x940] sm:$0xff]  ;;  %v1124_v32 = vpack.c.b16 %v1069_v22, %v1069_v22 }
 0x130   :  { %4286 = vmatpush.bf16.msra.mxu2 %v6662_v25  ;;  %v6693_v25 = vld [vmem:[#allocation6 + $0x980] sm:$0xff]  ;;  %v1126_v33 = vpack.c.b16 %v1071_v23, %v1071_v23 }
 0x131   :  { %4299 = vmatpush.bf16.msra.mxu3 %v6670_v29  ;;  %v1072_v29 = vunpack.c.h.b16 %v112_v17  ;;  %v6748_v17 = vld [vmem:[#allocation6 + $0xb38] sm:$0xff] }
 0x132   :  { %4261 = vmatpush.bf16.msra.mxu0 %v6645_v31  ;;  %v4055_v55 = vpop.f32.mrf.mxu0  ;;  %v6701_v31 = vld [vmem:[#allocation6 + $0x9c0] sm:$0xff] }
 0x133   :  { %4274 = vmatpush.bf16.msra.mxu1 %v6653_v34  ;;  %v4056_v56 = vadd.f32 %v4055_v55, %v7034_v19  ;;  %v4068_v58 = vpop.f32.mrf.mxu1  ;;  %v6702_v19 = vld [vmem:[#allocation6 + $0x9c8] sm:$0xff]  ;;  %v6740_v34 = vld [vmem:[#allocation6 + $0xaf8] sm:$0xff]  ;;  %v1127_v36 = vpack.c.b16 %v1072_v29, %v1072_v29  ;;  %v6763_v29 = vld [vmem:[#allocation6 + $0xbb0] sm:$0xff] }
 0x134   :  { %4287 = vmatpush.bf16.msra.mxu2 %v6661_v35  ;;  %v1125_v35 = vpack.c.b16 %v1070_v26, %v1070_v26  ;;  %v6728_v55 = vld [vmem:[#allocation6 + $0xa98] sm:$0xff] }
 0x135   :  { %4300 = vmatpush.bf16.msra.mxu3 %v6669_v41  ;;  %4262 = vmatmul.bf16.vlgmr.msra.gmra.mxu0 %v1120_v42  ;;  %v4069_v61 = vadd.f32 %v4068_v58, %v4056_v56  ;;  %v6714_v41 = vld [vmem:[#allocation6 + $0xa28] sm:$0xff]  ;;  %v6736_v58 = vld [vmem:[#allocation6 + $0xad8] sm:$0xff] }
 0x136   :  { %4306 = vmatpush.bf16.msrb.mxu0 %v6684_v37  ;;  %4275 = vmatmul.bf16.vlgmr.msra.gmra.mxu1 %v1121_v45  ;;  %v6715_v37 = vld [vmem:[#allocation6 + $0xa30] sm:$0xff]  ;;  %v6722_v42 = vld [vmem:[#allocation6 + $0xa68] sm:$0xff] }
 0x137   :  { %4319 = vmatpush.bf16.msrb.mxu1 %v6692_v38  ;;  %4288 = vmatmul.bf16.vlgmr.msra.gmra.mxu2 %v1122_v43  ;;  %v6723_v38 = vld [vmem:[#allocation6 + $0xa70] sm:$0xff]  ;;  %v6730_v43 = vld [vmem:[#allocation6 + $0xaa8] sm:$0xff] }
 0x138   :  { %4332 = vmatpush.bf16.msrb.mxu2 %v6700_v40  ;;  %4301 = vmatmul.bf16.vlgmr.msra.gmra.mxu3 %v1123_v46  ;;  %v6739_v40 = vld [vmem:[#allocation6 + $0xaf0] sm:$0xff] }
 0x139   :  { %4345 = vmatpush.bf16.msrb.mxu3 %v6708_v44  ;;  %v6738_v44 = vld [vmem:[#allocation6 + $0xae8] sm:$0xff] }
 0x13a   :  { %4307 = vmatpush.bf16.msrb.mxu0 %v6683_v47  ;;  %v4081_v2 = vpop.f32.mrf.mxu2  ;;  %v4057_v6 = vpop.f32.mrf.mxu0  ;;  %v6713_v47 = vld [vmem:[#allocation6 + $0xa20] sm:$0xff] }
 0x13b   :  { %4320 = vmatpush.bf16.msrb.mxu1 %v6691_v48  ;;  %v4082_v3 = vadd.f32 %v4081_v2, %v4069_v61  ;;  %v4094_v5 = vpop.f32.mrf.mxu3  ;;  %v4070_v9 = vpop.f32.mrf.mxu1  ;;  %v6735_v2 = vld [vmem:[#allocation6 + $0xad0] sm:$0xff]  ;;  %v113_v6 = vld [vmem:[#allocation2 + $0xa0] sm:$0xff] }
 0x13c   :  { %4333 = vmatpush.bf16.msrb.mxu2 %v6699_v49  ;;  %v6721_v49 = vld [vmem:[#allocation6 + $0xa60] sm:$0xff]  ;;  %v6734_v9 = vld [vmem:[#allocation6 + $0xac8] sm:$0xff]  ;;  %v1074_v16 = vunpack.c.h.b16 %v113_v6 }
 0x13d   :  { %4346 = vmatpush.bf16.msrb.mxu3 %v6707_v50  ;;  %v7037_v7 = vadd.f32 %v4094_v5, %v4082_v3  ;;  %v6729_v50 = vld [vmem:[#allocation6 + $0xaa0] sm:$0xff]  ;;  %v6710_v3 = vld [vmem:[#allocation6 + $0xa08] sm:$0xff] }
 0x13e   :  { %4308 = vmatpush.bf16.msrb.mxu0 %v6682_v51  ;;  %v6726_v5 = vld [vmem:[#allocation6 + $0xa88] sm:$0xff] }
 0x13f   :  { %4321 = vmatpush.bf16.msrb.mxu1 %v6690_v52  ;;  %v6737_v52 = vld [vmem:[#allocation6 + $0xae0] sm:$0xff] }
 0x140   :  { %4334 = vmatpush.bf16.msrb.mxu2 %v6698_v53  ;;  %v6712_v53 = vld [vmem:[#allocation6 + $0xa18] sm:$0xff] }
 0x141   :  { %4347 = vmatpush.bf16.msrb.mxu3 %v6706_v54  ;;  %v6720_v54 = vld [vmem:[#allocation6 + $0xa58] sm:$0xff] }
 0x142   :  { %4309 = vmatpush.bf16.msrb.mxu0 %v6681_v57  ;;  %v4083_v18 = vpop.f32.mrf.mxu2 }
 0x143   :  { %4322 = vmatpush.bf16.msrb.mxu1 %v6689_v59  ;;  %v4096_v20 = vpop.f32.mrf.mxu3  ;;  %v6756_v18 = vld [vmem:[#allocation6 + $0xb78] sm:$0xff] }
 0x144   :  { %4335 = vmatpush.bf16.msrb.mxu2 %v6697_v60  ;;  %v6764_v20 = vld [vmem:[#allocation6 + $0xbb8] sm:$0xff] }
 0x145   :  { %4348 = vmatpush.bf16.msrb.mxu3 %v6705_v62  ;;  %v6711_v62 = vld [vmem:[#allocation6 + $0xa10] sm:$0xff] }
 0x146   :  { %4310 = vmatpush.bf16.msrb.mxu0 %v6680_v63 }
 0x147   :  { %4323 = vmatpush.bf16.msrb.mxu1 %v6688_v0  ;;  %v6719_v0 = vld [vmem:[#allocation6 + $0xa50] sm:$0xff] }
 0x148   :  { %4336 = vmatpush.bf16.msrb.mxu2 %v6696_v1  ;;  %v6727_v1 = vld [vmem:[#allocation6 + $0xa90] sm:$0xff] }
 0x149   :  { %4349 = vmatpush.bf16.msrb.mxu3 %v6704_v4  ;;  %v6718_v4 = vld [vmem:[#allocation6 + $0xa48] sm:$0xff] }
 0x14a   :  { %4311 = vmatpush.bf16.msrb.mxu0 %v6679_v8 }
 0x14b   :  { %4324 = vmatpush.bf16.msrb.mxu1 %v6687_v10 }
 0x14c   :  { %4337 = vmatpush.bf16.msrb.mxu2 %v6695_v11  ;;  %v6709_v11 = vld [vmem:[#allocation6 + $0xa00] sm:$0xff] }
 0x14d   :  { %4350 = vmatpush.bf16.msrb.mxu3 %v6703_v12  ;;  %v1073_v12 = vunpack.c.l.b16 %v113_v6 }
 0x14e   :  { %4312 = vmatpush.bf16.msrb.mxu0 %v6678_v13 }
 0x14f   :  { %4325 = vmatpush.bf16.msrb.mxu1 %v6686_v14  ;;  %v6717_v14 = vld [vmem:[#allocation6 + $0xa40] sm:$0xff]  ;;  %v1128_v22 = vpack.c.b16 %v1073_v12, %v1073_v12 }
 0x150   :  { %4338 = vmatpush.bf16.msrb.mxu2 %v6694_v15  ;;  %v6725_v15 = vld [vmem:[#allocation6 + $0xa80] sm:$0xff] }
 0x151   :  { %4351 = vmatpush.bf16.msrb.mxu3 %v6702_v19 }
 0x152   :  { %4313 = vmatpush.bf16.msrb.mxu0 %v6677_v21  ;;  %v4107_v45 = vpop.f32.mrf.mxu0  ;;  %v6733_v21 = vld [vmem:[#allocation6 + $0xac0] sm:$0xff] }
 0x153   :  { %4326 = vmatpush.bf16.msrb.mxu1 %v6685_v24  ;;  %v4108_v46 = vadd.f32 %v4107_v45, %v7037_v7  ;;  %v4120_v48 = vpop.f32.mrf.mxu1  ;;  %v114_v7 = vld [vmem:[#allocation2 + $0xa8] sm:$0xff]  ;;  %v6772_v24 = vld [vmem:[#allocation6 + $0xbf8] sm:$0xff] }
 0x154   :  { %4339 = vmatpush.bf16.msrb.mxu2 %v6693_v25  ;;  %v1075_v13 = vunpack.c.l.b16 %v114_v7  ;;  %v1076_v19 = vunpack.c.h.b16 %v114_v7  ;;  %v1129_v25 = vpack.c.b16 %v1074_v16, %v1074_v16  ;;  %v6760_v45 = vld [vmem:[#allocation6 + $0xb98] sm:$0xff] }
 0x155   :  { %4352 = vmatpush.bf16.msrb.mxu3 %v6701_v31  ;;  %4314 = vmatmul.bf16.vlgmr.msrb.gmra.mxu0 %v1124_v32  ;;  %v4121_v51 = vadd.f32 %v4120_v48, %v4108_v46  ;;  %v6746_v31 = vld [vmem:[#allocation6 + $0xb28] sm:$0xff]  ;;  %v6768_v48 = vld [vmem:[#allocation6 + $0xbd8] sm:$0xff] }
 0x156   :  { %4358 = vmatpush.bf16.msra.mxu0 %v6716_v27  ;;  %4327 = vmatmul.bf16.vlgmr.msrb.gmra.mxu1 %v1125_v35  ;;  %v1130_v23 = vpack.c.b16 %v1075_v13, %v1075_v13  ;;  %v1131_v26 = vpack.c.b16 %v1076_v19, %v1076_v19  ;;  %v6747_v27 = vld [vmem:[#allocation6 + $0xb30] sm:$0xff]  ;;  %v6754_v32 = vld [vmem:[#allocation6 + $0xb68] sm:$0xff]  ;;  %v6780_v7 = vld [vmem:[#allocation6 + $0xc38] sm:$0xff] }
 0x157   :  { %4371 = vmatpush.bf16.msra.mxu1 %v6724_v28  ;;  %4340 = vmatmul.bf16.vlgmr.msrb.gmra.mxu2 %v1126_v33  ;;  %v6755_v28 = vld [vmem:[#allocation6 + $0xb70] sm:$0xff]  ;;  %v6762_v33 = vld [vmem:[#allocation6 + $0xba8] sm:$0xff] }
 0x158   :  { %4384 = vmatpush.bf16.msra.mxu2 %v6732_v30  ;;  %4353 = vmatmul.bf16.vlgmr.msrb.gmra.mxu3 %v1127_v36  ;;  %v6771_v30 = vld [vmem:[#allocation6 + $0xbf0] sm:$0xff] }
 0x159   :  { %4397 = vmatpush.bf16.msra.mxu3 %v6740_v34  ;;  %v6770_v34 = vld [vmem:[#allocation6 + $0xbe8] sm:$0xff]  ;;  %v6795_v19 = vld [vmem:[#allocation6 + $0xcb0] sm:$0xff] }
 0x15a   :  { %4359 = vmatpush.bf16.msra.mxu0 %v6715_v37  ;;  %v4133_v56 = vpop.f32.mrf.mxu2  ;;  %v4109_v60 = vpop.f32.mrf.mxu0  ;;  %v6745_v37 = vld [vmem:[#allocation6 + $0xb20] sm:$0xff] }
 0x15b   :  { %4372 = vmatpush.bf16.msra.mxu1 %v6723_v38  ;;  %v4134_v57 = vadd.f32 %v4133_v56, %v4121_v51  ;;  %v4146_v59 = vpop.f32.mrf.mxu3  ;;  %v4122_v63 = vpop.f32.mrf.mxu1  ;;  %v6767_v56 = vld [vmem:[#allocation6 + $0xbd0] sm:$0xff] }
 0x15c   :  { %4385 = vmatpush.bf16.msra.mxu2 %v6731_v39  ;;  %v6753_v39 = vld [vmem:[#allocation6 + $0xb60] sm:$0xff]  ;;  %v115_v60 = vld [vmem:[#allocation2 + $0xb0] sm:$0xff] }
 0x15d   :  { %4398 = vmatpush.bf16.msra.mxu3 %v6739_v40  ;;  %v7040_v61 = vadd.f32 %v4146_v59, %v4134_v57  ;;  %v6761_v40 = vld [vmem:[#allocation6 + $0xba0] sm:$0xff]  ;;  %v6742_v57 = vld [vmem:[#allocation6 + $0xb08] sm:$0xff]  ;;  %v1078_v6 = vunpack.c.h.b16 %v115_v60 }
 0x15e   :  { %4360 = vmatpush.bf16.msra.mxu0 %v6714_v41  ;;  %v6758_v59 = vld [vmem:[#allocation6 + $0xb88] sm:$0xff] }
 0x15f   :  { %4373 = vmatpush.bf16.msra.mxu1 %v6722_v42  ;;  %v6769_v42 = vld [vmem:[#allocation6 + $0xbe0] sm:$0xff]  ;;  %v6766_v63 = vld [vmem:[#allocation6 + $0xbc8] sm:$0xff] }
 0x160   :  { %4386 = vmatpush.bf16.msra.mxu2 %v6730_v43  ;;  %v6744_v43 = vld [vmem:[#allocation6 + $0xb18] sm:$0xff] }
 0x161   :  { %4399 = vmatpush.bf16.msra.mxu3 %v6738_v44  ;;  %v6752_v44 = vld [vmem:[#allocation6 + $0xb58] sm:$0xff] }
 0x162   :  { %4361 = vmatpush.bf16.msra.mxu0 %v6713_v47  ;;  %v4135_v8 = vpop.f32.mrf.mxu2 }
 0x163   :  { %4374 = vmatpush.bf16.msra.mxu1 %v6721_v49  ;;  %v4148_v10 = vpop.f32.mrf.mxu3  ;;  %v6788_v8 = vld [vmem:[#allocation6 + $0xc78] sm:$0xff] }
 0x164   :  { %4387 = vmatpush.bf16.msra.mxu2 %v6729_v50  ;;  %v6796_v10 = vld [vmem:[#allocation6 + $0xcb8] sm:$0xff] }
 0x165   :  { %4400 = vmatpush.bf16.msra.mxu3 %v6737_v52  ;;  %v6743_v52 = vld [vmem:[#allocation6 + $0xb10] sm:$0xff] }
 0x166   :  { %4362 = vmatpush.bf16.msra.mxu0 %v6712_v53 }
 0x167   :  { %4375 = vmatpush.bf16.msra.mxu1 %v6720_v54  ;;  %v6751_v54 = vld [vmem:[#allocation6 + $0xb50] sm:$0xff] }
 0x168   :  { %4388 = vmatpush.bf16.msra.mxu2 %v6728_v55  ;;  %v6759_v55 = vld [vmem:[#allocation6 + $0xb90] sm:$0xff] }
 0x169   :  { %4401 = vmatpush.bf16.msra.mxu3 %v6736_v58  ;;  %v6750_v58 = vld [vmem:[#allocation6 + $0xb48] sm:$0xff] }
 0x16a   :  { %4363 = vmatpush.bf16.msra.mxu0 %v6711_v62 }
 0x16b   :  { %4376 = vmatpush.bf16.msra.mxu1 %v6719_v0 }
 0x16c   :  { %4389 = vmatpush.bf16.msra.mxu2 %v6727_v1  ;;  %v6741_v1 = vld [vmem:[#allocation6 + $0xb00] sm:$0xff] }
 0x16d   :  { %4402 = vmatpush.bf16.msra.mxu3 %v6735_v2  ;;  %v1077_v2 = vunpack.c.l.b16 %v115_v60 }
 0x16e   :  { %4364 = vmatpush.bf16.msra.mxu0 %v6710_v3 }
 0x16f   :  { %4377 = vmatpush.bf16.msra.mxu1 %v6718_v4  ;;  %v6749_v4 = vld [vmem:[#allocation6 + $0xb40] sm:$0xff]  ;;  %v1132_v12 = vpack.c.b16 %v1077_v2, %v1077_v2 }
 0x170   :  { %4390 = vmatpush.bf16.msra.mxu2 %v6726_v5  ;;  %v6757_v5 = vld [vmem:[#allocation6 + $0xb80] sm:$0xff] }
 0x171   :  { %4403 = vmatpush.bf16.msra.mxu3 %v6734_v9 }
 0x172   :  { %4365 = vmatpush.bf16.msra.mxu0 %v6709_v11  ;;  %v4159_v35 = vpop.f32.mrf.mxu0  ;;  %v6765_v11 = vld [vmem:[#allocation6 + $0xbc0] sm:$0xff] }
 0x173   :  { %4378 = vmatpush.bf16.msra.mxu1 %v6717_v14  ;;  %v4160_v36 = vadd.f32 %v4159_v35, %v7040_v61  ;;  %v4172_v38 = vpop.f32.mrf.mxu1  ;;  %v116_v61 = vld [vmem:[#allocation2 + $0xb8] sm:$0xff] }
 0x174   :  { %4391 = vmatpush.bf16.msra.mxu2 %v6725_v15  ;;  %v1079_v3 = vunpack.c.l.b16 %v116_v61  ;;  %v1080_v9 = vunpack.c.h.b16 %v116_v61  ;;  %v6804_v14 = vld [vmem:[#allocation6 + $0xcf8] sm:$0xff]  ;;  %v1133_v15 = vpack.c.b16 %v1078_v6, %v1078_v6  ;;  %v6811_v6 = vld [vmem:[#allocation6 + $0xd30] sm:$0xff] }
 0x175   :  { %4404 = vmatpush.bf16.msra.mxu3 %v6733_v21  ;;  %4366 = vmatmul.bf16.vlgmr.msra.gmra.mxu0 %v1128_v22  ;;  %v4173_v41 = vadd.f32 %v4172_v38, %v4160_v36  ;;  %v6778_v21 = vld [vmem:[#allocation6 + $0xc28] sm:$0xff]  ;;  %v6792_v35 = vld [vmem:[#allocation6 + $0xc98] sm:$0xff] }
 0x176   :  { %4410 = vmatpush.bf16.msrb.mxu0 %v6748_v17  ;;  %4379 = vmatmul.bf16.vlgmr.msra.gmra.mxu1 %v1129_v25  ;;  %v1134_v13 = vpack.c.b16 %v1079_v3, %v1079_v3  ;;  %v1135_v16 = vpack.c.b16 %v1080_v9, %v1080_v9  ;;  %v6779_v17 = vld [vmem:[#allocation6 + $0xc30] sm:$0xff]  ;;  %v6786_v22 = vld [vmem:[#allocation6 + $0xc68] sm:$0xff]  ;;  %v6800_v38 = vld [vmem:[#allocation6 + $0xcd8] sm:$0xff] }
 0x177   :  { %4423 = vmatpush.bf16.msrb.mxu1 %v6756_v18  ;;  %4392 = vmatmul.bf16.vlgmr.msra.gmra.mxu2 %v1130_v23  ;;  %v6787_v18 = vld [vmem:[#allocation6 + $0xc70] sm:$0xff]  ;;  %v6794_v23 = vld [vmem:[#allocation6 + $0xca8] sm:$0xff]  ;;  %v6812_v61 = vld [vmem:[#allocation6 + $0xd38] sm:$0xff] }
 0x178   :  { %4436 = vmatpush.bf16.msrb.mxu2 %v6764_v20  ;;  %4405 = vmatmul.bf16.vlgmr.msra.gmra.mxu3 %v1131_v26  ;;  %v6803_v20 = vld [vmem:[#allocation6 + $0xcf0] sm:$0xff]  ;;  %v6810_v9 = vld [vmem:[#allocation6 + $0xd28] sm:$0xff] }
 0x179   :  { %4449 = vmatpush.bf16.msrb.mxu3 %v6772_v24  ;;  %v6802_v24 = vld [vmem:[#allocation6 + $0xce8] sm:$0xff] }
 0x17a   :  { %4411 = vmatpush.bf16.msrb.mxu0 %v6747_v27  ;;  %v4185_v46 = vpop.f32.mrf.mxu2  ;;  %v4161_v50 = vpop.f32.mrf.mxu0  ;;  %v6777_v27 = vld [vmem:[#allocation6 + $0xc20] sm:$0xff] }
 0x17b   :  { %4424 = vmatpush.bf16.msrb.mxu1 %v6755_v28  ;;  %v4186_v47 = vadd.f32 %v4185_v46, %v4173_v41  ;;  %v4198_v49 = vpop.f32.mrf.mxu3  ;;  %v4174_v53 = vpop.f32.mrf.mxu1  ;;  %v6799_v46 = vld [vmem:[#allocation6 + $0xcd0] sm:$0xff]  ;;  %v117_v50 = vld [vmem:[#allocation2 + $0xc0] sm:$0xff] }
 0x17c   :  { %4437 = vmatpush.bf16.msrb.mxu2 %v6763_v29  ;;  %v6785_v29 = vld [vmem:[#allocation6 + $0xc60] sm:$0xff]  ;;  %v6798_v53 = vld [vmem:[#allocation6 + $0xcc8] sm:$0xff]  ;;  %v1082_v60 = vunpack.c.h.b16 %v117_v50 }
 0x17d   :  { %4450 = vmatpush.bf16.msrb.mxu3 %v6771_v30  ;;  %v7043_v51 = vadd.f32 %v4198_v49, %v4186_v47  ;;  %v6793_v30 = vld [vmem:[#allocation6 + $0xca0] sm:$0xff]  ;;  %v6774_v47 = vld [vmem:[#allocation6 + $0xc08] sm:$0xff] }
 0x17e   :  { %4412 = vmatpush.bf16.msrb.mxu0 %v6746_v31  ;;  %v6790_v49 = vld [vmem:[#allocation6 + $0xc88] sm:$0xff] }
 0x17f   :  { %4425 = vmatpush.bf16.msrb.mxu1 %v6754_v32  ;;  %v6801_v32 = vld [vmem:[#allocation6 + $0xce0] sm:$0xff] }
 0x180   :  { %4438 = vmatpush.bf16.msrb.mxu2 %v6762_v33  ;;  %v6776_v33 = vld [vmem:[#allocation6 + $0xc18] sm:$0xff] }
 0x181   :  { %4451 = vmatpush.bf16.msrb.mxu3 %v6770_v34  ;;  %v6784_v34 = vld [vmem:[#allocation6 + $0xc58] sm:$0xff] }
 0x182   :  { %4413 = vmatpush.bf16.msrb.mxu0 %v6745_v37  ;;  %v4187_v62 = vpop.f32.mrf.mxu2 }
 0x183   :  { %4426 = vmatpush.bf16.msrb.mxu1 %v6753_v39  ;;  %v4200_v0 = vpop.f32.mrf.mxu3  ;;  %v6820_v62 = vld [vmem:[#allocation6 + $0xd78] sm:$0xff] }
 0x184   :  { %4439 = vmatpush.bf16.msrb.mxu2 %v6761_v40  ;;  %v6828_v0 = vld [vmem:[#allocation6 + $0xdb8] sm:$0xff] }
 0x185   :  { %4452 = vmatpush.bf16.msrb.mxu3 %v6769_v42  ;;  %v6775_v42 = vld [vmem:[#allocation6 + $0xc10] sm:$0xff] }
 0x186   :  { %4414 = vmatpush.bf16.msrb.mxu0 %v6744_v43 }
 0x187   :  { %4427 = vmatpush.bf16.msrb.mxu1 %v6752_v44  ;;  %v6783_v44 = vld [vmem:[#allocation6 + $0xc50] sm:$0xff] }
 0x188   :  { %4440 = vmatpush.bf16.msrb.mxu2 %v6760_v45  ;;  %v6791_v45 = vld [vmem:[#allocation6 + $0xc90] sm:$0xff] }
 0x189   :  { %4453 = vmatpush.bf16.msrb.mxu3 %v6768_v48  ;;  %v6782_v48 = vld [vmem:[#allocation6 + $0xc48] sm:$0xff] }
 0x18a   :  { %4415 = vmatpush.bf16.msrb.mxu0 %v6743_v52 }
 0x18b   :  { %4428 = vmatpush.bf16.msrb.mxu1 %v6751_v54 }
 0x18c   :  { %4441 = vmatpush.bf16.msrb.mxu2 %v6759_v55  ;;  %v6773_v55 = vld [vmem:[#allocation6 + $0xc00] sm:$0xff] }
 0x18d   :  { %4454 = vmatpush.bf16.msrb.mxu3 %v6767_v56  ;;  %v1081_v56 = vunpack.c.l.b16 %v117_v50 }
 0x18e   :  { %4416 = vmatpush.bf16.msrb.mxu0 %v6742_v57 }
 0x18f   :  { %4429 = vmatpush.bf16.msrb.mxu1 %v6750_v58  ;;  %v6781_v58 = vld [vmem:[#allocation6 + $0xc40] sm:$0xff]  ;;  %v1136_v2 = vpack.c.b16 %v1081_v56, %v1081_v56 }
 0x190   :  { %4442 = vmatpush.bf16.msrb.mxu2 %v6758_v59  ;;  %v6789_v59 = vld [vmem:[#allocation6 + $0xc80] sm:$0xff] }
 0x191   :  { %4455 = vmatpush.bf16.msrb.mxu3 %v6766_v63 }
 0x192   :  { %4417 = vmatpush.bf16.msrb.mxu0 %v6741_v1  ;;  %v4211_v25 = vpop.f32.mrf.mxu0  ;;  %v6797_v1 = vld [vmem:[#allocation6 + $0xcc0] sm:$0xff] }
 0x193   :  { %4430 = vmatpush.bf16.msrb.mxu1 %v6749_v4  ;;  %v4212_v26 = vadd.f32 %v4211_v25, %v7043_v51  ;;  %v4224_v28 = vpop.f32.mrf.mxu1  ;;  %v118_v51 = vld [vmem:[#allocation2 + $0xc8] sm:$0xff]  ;;  %v1137_v4 = vpack.c.b16 %v1082_v60, %v1082_v60 }
 0x194   :  { %4443 = vmatpush.bf16.msrb.mxu2 %v6757_v5  ;;  %v1083_v57 = vunpack.c.l.b16 %v118_v51  ;;  %v1084_v63 = vunpack.c.h.b16 %v118_v51 }
 0x195   :  { %4456 = vmatpush.bf16.msrb.mxu3 %v6765_v11  ;;  %4418 = vmatmul.bf16.vlgmr.msrb.gmra.mxu0 %v1132_v12  ;;  %v4225_v31 = vadd.f32 %v4224_v28, %v4212_v26  ;;  %v6826_v11 = vld [vmem:[#allocation6 + $0xda8] sm:$0xff] }
 0x196   :  { %4462 = vmatpush.bf16.msra.mxu0 %v6780_v7  ;;  %4431 = vmatmul.bf16.vlgmr.msrb.gmra.mxu1 %v1133_v15  ;;  %v1138_v3 = vpack.c.b16 %v1083_v57, %v1083_v57  ;;  %v1139_v5 = vpack.c.b16 %v1084_v63, %v1084_v63  ;;  %v6819_v7 = vld [vmem:[#allocation6 + $0xd70] sm:$0xff] }
 0x197   :  { %4475 = vmatpush.bf16.msra.mxu1 %v6788_v8  ;;  %4444 = vmatmul.bf16.vlgmr.msrb.gmra.mxu2 %v1134_v13  ;;  %v6827_v8 = vld [vmem:[#allocation6 + $0xdb0] sm:$0xff] }
 0x198   :  { %4488 = vmatpush.bf16.msra.mxu2 %v6796_v10  ;;  %4457 = vmatmul.bf16.vlgmr.msrb.gmra.mxu3 %v1135_v16  ;;  %v6818_v10 = vld [vmem:[#allocation6 + $0xd68] sm:$0xff]  ;;  %v6817_v16 = vld [vmem:[#allocation6 + $0xd60] sm:$0xff] }
 0x199   :  { %4501 = vmatpush.bf16.msra.mxu3 %v6804_v14  ;;  %v6809_v14 = vld [vmem:[#allocation6 + $0xd20] sm:$0xff] }
 0x19a   :  { %4463 = vmatpush.bf16.msra.mxu0 %v6779_v17  ;;  %v4237_v36 = vpop.f32.mrf.mxu2  ;;  %v4213_v40 = vpop.f32.mrf.mxu0  ;;  %v6825_v17 = vld [vmem:[#allocation6 + $0xda0] sm:$0xff] }
 0x19b   :  { %4476 = vmatpush.bf16.msra.mxu1 %v6787_v18  ;;  %v4238_v37 = vadd.f32 %v4237_v36, %v4225_v31  ;;  %v4250_v39 = vpop.f32.mrf.mxu3  ;;  %v4226_v43 = vpop.f32.mrf.mxu1  ;;  %v6806_v31 = vld [vmem:[#allocation6 + $0xd08] sm:$0xff] }
 0x19c   :  { %4489 = vmatpush.bf16.msra.mxu2 %v6795_v19  ;;  %v6808_v19 = vld [vmem:[#allocation6 + $0xd18] sm:$0xff]  ;;  %v6821_v43 = vld [vmem:[#allocation6 + $0xd80] sm:$0xff] }
 0x19d   :  { %4502 = vmatpush.bf16.msra.mxu3 %v6803_v20  ;;  %v4251_v41 = vadd.f32 %v4250_v39, %v4238_v37  ;;  %v6816_v20 = vld [vmem:[#allocation6 + $0xd58] sm:$0xff]  ;;  %v6805_v39 = vld [vmem:[#allocation6 + $0xd00] sm:$0xff] }
 0x19e   :  { %4464 = vmatpush.bf16.msra.mxu0 %v6778_v21  ;;  %v6824_v21 = vld [vmem:[#allocation6 + $0xd98] sm:$0xff] }
 0x19f   :  { %4477 = vmatpush.bf16.msra.mxu1 %v6786_v22 }
 0x1a0   :  { %4490 = vmatpush.bf16.msra.mxu2 %v6794_v23 }
 0x1a1   :  { %4503 = vmatpush.bf16.msra.mxu3 %v6802_v24 }
 0x1a2   :  { %4465 = vmatpush.bf16.msra.mxu0 %v6777_v27  ;;  %v4239_v52 = vpop.f32.mrf.mxu2  ;;  %v6807_v27 = vld [vmem:[#allocation6 + $0xd10] sm:$0xff] }
 0x1a3   :  { %4478 = vmatpush.bf16.msra.mxu1 %v6785_v29  ;;  %v4252_v54 = vpop.f32.mrf.mxu3  ;;  %v6815_v29 = vld [vmem:[#allocation6 + $0xd50] sm:$0xff] }
 0x1a4   :  { %4491 = vmatpush.bf16.msra.mxu2 %v6793_v30  ;;  %v6823_v30 = vld [vmem:[#allocation6 + $0xd90] sm:$0xff] }
 0x1a5   :  { %4504 = vmatpush.bf16.msra.mxu3 %v6801_v32  ;;  %v119_v32 = vld [vmem:[#allocation2 + $0xd0] sm:$0xff] }
 0x1a6   :  { %4466 = vmatpush.bf16.msra.mxu0 %v6776_v33  ;;  %v6814_v33 = vld [vmem:[#allocation6 + $0xd48] sm:$0xff]  ;;  %v1085_v37 = vunpack.c.l.b16 %v119_v32  ;;  %v1086_v40 = vunpack.c.h.b16 %v119_v32 }
 0x1a7   :  { %4479 = vmatpush.bf16.msra.mxu1 %v6784_v34  ;;  %v6822_v34 = vld [vmem:[#allocation6 + $0xd88] sm:$0xff] }
 0x1a8   :  { %4492 = vmatpush.bf16.msra.mxu2 %v6792_v35  ;;  %v120_v35 = vld [vmem:[#allocation2 + $0xd8] sm:$0xf] }
 0x1a9   :  { %4505 = vmatpush.bf16.msra.mxu3 %v6800_v38 }
 0x1aa   :  { %4467 = vmatpush.bf16.msra.mxu0 %v6775_v42  ;;  %v6813_v42 = vld [vmem:[#allocation6 + $0xd40] sm:$0xff] }
 0x1ab   :  { %4480 = vmatpush.bf16.msra.mxu1 %v6783_v44  ;;  %v1140_v44 = vpack.c.b16 %v1085_v37, %v1085_v37 }
 0x1ac   :  { %4493 = vmatpush.bf16.msra.mxu2 %v6791_v45  ;;  %v1141_v45 = vpack.c.b16 %v1086_v40, %v1086_v40 }
 0x1ad   :  { %4506 = vmatpush.bf16.msra.mxu3 %v6799_v46 }
 0x1ae   :  { %4468 = vmatpush.bf16.msra.mxu0 %v6774_v47 }
 0x1af   :  { %4481 = vmatpush.bf16.msra.mxu1 %v6782_v48 }
 0x1b0   :  { %4494 = vmatpush.bf16.msra.mxu2 %v6790_v49 }
 0x1b1   :  { %4507 = vmatpush.bf16.msra.mxu3 %v6798_v53 }
 0x1b2   :  { %4469 = vmatpush.bf16.msra.mxu0 %v6773_v55  ;;  %v4263_v12 = vpop.f32.mrf.mxu0 }
 0x1b3   :  { %4482 = vmatpush.bf16.msra.mxu1 %v6781_v58  ;;  %v4264_v13 = vadd.f32 %v4263_v12, %v4251_v41  ;;  %v4276_v15 = vpop.f32.mrf.mxu1  ;;  %v1087_v41 = vunpack.c.l.b16 %v120_v35 }
 0x1b4   :  { %4495 = vmatpush.bf16.msra.mxu2 %v6789_v59 }
 0x1b5   :  { %4508 = vmatpush.bf16.msra.mxu3 %v6797_v1  ;;  %4470 = vmatmul.bf16.vlgmr.msra.gmra.mxu0 %v1136_v2  ;;  %v4277_v18 = vadd.f32 %v4276_v15, %v4264_v13  ;;  %v1142_v46 = vpack.c.b16 %v1087_v41, %v1087_v41  ;;  %v4572_v15 = vld [vmem:[%s7101_s4 + $0x68] sm:$0xff] }
 0x1b6   :  { %4514 = vmatpush.bf16.msrb.mxu0 %v6812_v61  ;;  %4483 = vmatmul.bf16.vlgmr.msra.gmra.mxu1 %v1137_v4 }
 0x1b7   :  { %4527 = vmatpush.bf16.msrb.mxu1 %v6820_v62  ;;  %4496 = vmatmul.bf16.vlgmr.msra.gmra.mxu2 %v1138_v3 }
 0x1b8   :  { %4540 = vmatpush.bf16.msrb.mxu2 %v6828_v0  ;;  %4509 = vmatmul.bf16.vlgmr.msra.gmra.mxu3 %v1139_v5 }
 0x1ba   :  { %4515 = vmatpush.bf16.msrb.mxu0 %v6811_v6  ;;  %v4289_v22 = vpop.f32.mrf.mxu2  ;;  %v4265_v25 = vpop.f32.mrf.mxu0 }
 0x1bb   :  { %4528 = vmatpush.bf16.msrb.mxu1 %v6819_v7  ;;  %v4290_v23 = vadd.f32 %v4289_v22, %v4277_v18  ;;  %v4302_v24 = vpop.f32.mrf.mxu3  ;;  %v4278_v28 = vpop.f32.mrf.mxu1  ;;  %v4567_v22 = vld [vmem:[%s7101_s4 + $0x40] sm:$0xff]  ;;  %v4564_v25 = vld [vmem:[%s7101_s4 + $0x28] sm:$0xff] }
 0x1bc   :  { %4541 = vmatpush.bf16.msrb.mxu2 %v6827_v8  ;;  %v4562_v28 = vld [vmem:[%s7101_s4 + $0x18] sm:$0xff] }
 0x1bd   :  { %v4303_v26 = vadd.f32 %v4302_v24, %v4290_v23  ;;  %v4566_v23 = vld [vmem:[%s7101_s4 + $0x38] sm:$0xff]  ;;  %v4565_v24 = vld [vmem:[%s7101_s4 + $0x30] sm:$0xff] }
 0x1be   :  { %4516 = vmatpush.bf16.msrb.mxu0 %v6810_v9 }
 0x1bf   :  { %4529 = vmatpush.bf16.msrb.mxu1 %v6818_v10  ;;  %v4574_v10 = vld [vmem:[%s7101_s4 + $0x78] sm:$0xff] }
 0x1c0   :  { %4542 = vmatpush.bf16.msrb.mxu2 %v6826_v11  ;;  %v4573_v11 = vld [vmem:[%s7101_s4 + $0x70] sm:$0xff]  ;;  %4579 = vmatpush.msrb.mxu3 %v4574_v10 }
 0x1c2   :  { %4517 = vmatpush.bf16.msrb.mxu0 %v6809_v14  ;;  %v4291_v36 = vpop.f32.mrf.mxu2  ;;  %4580 = vmatpush.msrb.mxu3 %v4573_v11 }
 0x1c3   :  { %4530 = vmatpush.bf16.msrb.mxu1 %v6817_v16  ;;  %v4304_v38 = vpop.f32.mrf.mxu3  ;;  %v4571_v16 = vld [vmem:[%s7101_s4 + $0x60] sm:$0xff] }
 0x1c4   :  { %4543 = vmatpush.bf16.msrb.mxu2 %v6825_v17  ;;  %4581 = vmatpush.msrb.mxu3 %v4572_v15  ;;  %v4570_v17 = vld [vmem:[%s7101_s4 + $0x58] sm:$0xff] }
 0x1c6   :  { %4518 = vmatpush.bf16.msrb.mxu0 %v6808_v19  ;;  %4582 = vmatpush.msrb.mxu3 %v4571_v16  ;;  %v4569_v19 = vld [vmem:[%s7101_s4 + $0x50] sm:$0xff] }
 0x1c7   :  { %4531 = vmatpush.bf16.msrb.mxu1 %v6816_v20 }
 0x1c8   :  { %4544 = vmatpush.bf16.msrb.mxu2 %v6824_v21  ;;  %4583 = vmatpush.msrb.mxu3 %v4570_v17  ;;  %v4568_v21 = vld [vmem:[%s7101_s4 + $0x48] sm:$0xff] }
 0x1ca   :  { %4519 = vmatpush.bf16.msrb.mxu0 %v6807_v27  ;;  %4584 = vmatpush.msrb.mxu3 %v4569_v19 }
 0x1cb   :  { %4532 = vmatpush.bf16.msrb.mxu1 %v6815_v29 }
 0x1cc   :  { %4545 = vmatpush.bf16.msrb.mxu2 %v6823_v30  ;;  %4585 = vmatpush.msrb.mxu3 %v4568_v21  ;;  %v4561_v30 = vld [vmem:[%s7101_s4 + $0x10] sm:$0xff] }
 0x1ce   :  { %4520 = vmatpush.bf16.msrb.mxu0 %v6806_v31  ;;  %4586 = vmatpush.msrb.mxu3 %v4567_v22  ;;  %v4560_v31 = vld [vmem:[%s7101_s4 + $0x8] sm:$0xff] }
 0x1cf   :  { %4533 = vmatpush.bf16.msrb.mxu1 %v6814_v33 }
 0x1d0   :  { %4546 = vmatpush.bf16.msrb.mxu2 %v6822_v34  ;;  %4587 = vmatpush.msrb.mxu3 %v4566_v23  ;;  %v4559_v34 = vld [vmem:[%s7101_s4] sm:$0xff] }
 0x1d2   :  { %4521 = vmatpush.bf16.msrb.mxu0 %v6805_v39  ;;  %v4315_v47 = vpop.f32.mrf.mxu0  ;;  %4588 = vmatpush.msrb.mxu3 %v4565_v24 }
 0x1d3   :  { %4534 = vmatpush.bf16.msrb.mxu1 %v6813_v42  ;;  %v4316_v48 = vadd.f32 %v4315_v47, %v4303_v26  ;;  %v4328_v49 = vpop.f32.mrf.mxu1  ;;  %v4563_v26 = vld [vmem:[%s7101_s4 + $0x20] sm:$0xff] }
 0x1d4   :  { %4547 = vmatpush.bf16.msrb.mxu2 %v6821_v43  ;;  %4589 = vmatpush.msrb.mxu3 %v4564_v25 }
 0x1d5   :  { %4522 = vmatmul.bf16.vlgmr.msrb.gmra.mxu0 %v1140_v44  ;;  %v4329_v50 = vadd.f32 %v4328_v49, %v4316_v48 }
 0x1d6   :  { %4535 = vmatmul.bf16.vlgmr.msrb.gmra.mxu1 %v1141_v45  ;;  %4590 = vmatpush.msrb.mxu3 %v4563_v26 }
 0x1d7   :  { %4548 = vmatmul.bf16.vlgmr.msrb.gmra.mxu2 %v1142_v46 }
 0x1d8   :  { %4591 = vmatpush.msrb.mxu3 %v4562_v28 }
 0x1da   :  { %v4341_v51 = vpop.f32.mrf.mxu2  ;;  %v4317_v54 = vpop.f32.mrf.mxu0  ;;  %4592 = vmatpush.msrb.mxu3 %v4561_v30 }
 0x1db   :  { %v4342_v52 = vadd.f32 %v4341_v51, %v4329_v50  ;;  %v4354_v53 = vpop.f32.mrf.mxu3  ;;  %v4330_v56 = vpop.f32.mrf.mxu1  ;;  %v4553_v50 = vld [vmem:[#allocation4] sm:$0xff] }
 0x1dc   :  { %4593 = vmatpush.msrb.mxu3 %v4560_v31  ;;  %vm4554_vm0 = vcmp.lt.f32.partialorder %v4553_v50, 0.5 }
 0x1dd   :  { %v4355_v55 = vadd.f32 %v4354_v53, %v4342_v52 }
 0x1de   :  { %4594 = vmatpush.msrb.mxu3 %v4559_v34 }
 0x1e2   :  { %v4343_v57 = vpop.f32.mrf.mxu2 }
 0x1e3   :  { %v4356_v58 = vpop.f32.mrf.mxu3 }
 0x1e4   :  { %v6837_v58 = vld [vmem:[#allocation9] ss:$0 sm:$0xff] }
 0x1f2   :  { %v4367_v59 = vpop.f32.mrf.mxu0 }
 0x1f3   :  { %v4368_v60 = vadd.f32 %v4367_v59, %v4355_v55  ;;  %v4380_v61 = vpop.f32.mrf.mxu1 }
 0x1f5   :  { %v4381_v62 = vadd.f32 %v4380_v61, %v4368_v60 }
 0x1fa   :  { %v4393_v63 = vpop.f32.mrf.mxu2  ;;  %v4369_v2 = vpop.f32.mrf.mxu0 }
 0x1fb   :  { %v4394_v0 = vadd.f32 %v4393_v63, %v4381_v62  ;;  %v4406_v1 = vpop.f32.mrf.mxu3  ;;  %v4382_v4 = vpop.f32.mrf.mxu1 }
 0x1fd   :  { %v4407_v3 = vadd.f32 %v4406_v1, %v4394_v0 }
 0x202   :  { %v4395_v5 = vpop.f32.mrf.mxu2 }
 0x203   :  { %v4408_v6 = vpop.f32.mrf.mxu3 }
 0x212   :  { %v4419_v7 = vpop.f32.mrf.mxu0 }
 0x213   :  { %v4432_v8 = vpop.f32.mrf.mxu1  ;;  %v4420_v33 = vadd.f32 %v4419_v7, %v4407_v3 }
 0x215   :  { %v4433_v38 = vadd.f32 %v4432_v8, %v4420_v33 }
 0x21a   :  { %v4445_v9 = vpop.f32.mrf.mxu2  ;;  %v4421_v13 = vpop.f32.mrf.mxu0 }
 0x21b   :  { %v4458_v12 = vpop.f32.mrf.mxu3  ;;  %v4434_v14 = vpop.f32.mrf.mxu1  ;;  %v4446_v39 = vadd.f32 %v4445_v9, %v4433_v38 }
 0x21d   :  { %v4459_v42 = vadd.f32 %v4458_v12, %v4446_v39 }
 0x222   :  { %v4447_v18 = vpop.f32.mrf.mxu2 }
 0x223   :  { %v4460_v20 = vpop.f32.mrf.mxu3 }
 0x232   :  { %v4471_v27 = vpop.f32.mrf.mxu0 }
 0x233   :  { %v4484_v29 = vpop.f32.mrf.mxu1  ;;  %v4472_v43 = vadd.f32 %v4471_v27, %v4459_v42 }
 0x235   :  { %v4485_v44 = vadd.f32 %v4484_v29, %v4472_v43 }
 0x23a   :  { %v4497_v32 = vpop.f32.mrf.mxu2  ;;  %v4473_v36 = vpop.f32.mrf.mxu0 }
 0x23b   :  { %v4510_v35 = vpop.f32.mrf.mxu3  ;;  %v4486_v37 = vpop.f32.mrf.mxu1  ;;  %v4498_v45 = vadd.f32 %v4497_v32, %v4485_v44 }
 0x23d   :  { %v4511_v46 = vadd.f32 %v4510_v35, %v4498_v45 }
 0x242   :  { %v4499_v40 = vpop.f32.mrf.mxu2 }
 0x243   :  { %v4512_v41 = vpop.f32.mrf.mxu3 }
 0x252   :  { %v4523_v47 = vpop.f32.mrf.mxu0 }
 0x253   :  { %v4536_v48 = vpop.f32.mrf.mxu1  ;;  %v4524_v49 = vadd.f32 %v4523_v47, %v4511_v46 }
 0x255   :  { %v4537_v51 = vadd.f32 %v4536_v48, %v4524_v49 }
 0x25a   :  { %v4549_v52 = vpop.f32.mrf.mxu2  ;;  %v4525_v54 = vpop.f32.mrf.mxu0 }
 0x25b   :  { %v4550_v53 = vadd.f32 %v4549_v52, %v4537_v51  ;;  %v4538_v55 = vpop.f32.mrf.mxu1 }
 0x25d   :  { %vm4555_vm1 = vcmp.gt.f32.partialorder %v4550_v53, 0.0  ;;  %v4557_v56 = vmul.f32 2.0, %v4550_v53 }
 0x25e   :  { %vm4556_vm2 = vmand %vm4554_vm0, %vm4555_vm1 }
 0x25f   :  { %6387 = vmatmul.msk.f32.vlgmr.msrb.gmra.mxu3 %vm4556_vm2, %v4557_v56 }
 0x262   :  { %v4551_v57 = vpop.f32.mrf.mxu2 }
 0x2e2   :  { %v4596_v59 = vpop.f32.mrf.mxu3 }
 0x2e3   :  { %v4597_v60 = vadd.f32 %v6837_v58, %v4596_v59 }
 0x2e5   :  { %v6388_v61 = vmul.f32 -1.442695, %v4597_v60 }
 0x2e7   :  { %6838 = vpow2.f32 %v6388_v61 }
 0x2ed   :  { %v6839_v62 = vpop.eup %6838 }
 0x2ee   :  { %v4602_v63 = vadd.f32 1.0, %v6839_v62 }
 0x2f0   :  { %6840 = vrcp.f32 %v4602_v63  ;;  %v4614_v3 = vand.u32 2147483648, %v4602_v63  ;;  %v4612_v5 = vand.u32 2147483647, %v4602_v63  ;;  %vm4608_vm4 = vweird.f32 %v4602_v63 }
 0x2f2   :  { %v4615_v7 = vor.u32 1.1754944e-38, %v4614_v3  ;;  %vm4613_vm7 = vcmp.eq.f32.partialorder %v4612_v5, 8.507059e+37 }
 0x2f6   :  { %v6841_v0 = vpop.eup %6840 }
 0x2f7   :  { %v4604_v1 = vmul.f32 %v6841_v0, %v4602_v63  ;;  %vm4609_vm3 = vweird.f32 %v6841_v0 }
 0x2f8   :  { %vm4610_vm5 = vmor %vm4608_vm4, %vm4609_vm3 }
 0x2f9   :  { %v4605_v2 = vsub.f32 1.0, %v4604_v1 }
 0x2fb   :  { %v4606_v4 = vmul.f32 %v6841_v0, %v4605_v2 }
 0x2fd   :  { %v4607_v6 = vadd.f32 %v6841_v0, %v4606_v4 }
 0x2ff   :  { %v4611_v8 = vsel %vm4610_vm5, %v6841_v0, %v4607_v6 }
 0x300   :  { %v4616_v9 = vsel %vm4613_vm7, %v4615_v7, %v4611_v8 }
 0x301   :  { %4619 = vst.msk [vmem:[%s7103_s6] sm:$0xff] %vm4618_vm6, %v4616_v9 }
 0x302   :  { %4624 = vsyncpa [#allocation3], 1 }
 0x303   :  { %4625 = vsyncpa [#allocation5], 1 }
 0x304   :  { %4626 = vsyncpa [#allocation8], 1 }

</bundles_post_ra>
